<compile_context>
chip_gen: v6e
topology: v6e:2x2x1
jax: 0.10.0
libtpu: 0.0.40
codegen_flags: <defaults>
</compile_context>

<pallas_src>
import jax
import jax.numpy as jnp
from jax.experimental import pallas as pl
from jax.experimental.pallas import tpu as pltpu


def _round_up(x, m):
    return (x + m - 1) // m * m


# ------------------------------------------------------------------ fused GEMM --

def fused_gemm(a, wm, col_scale, col_shift, bias, *, prologue_act="none",
               epilogue_act="none", with_stats=False, out_dtype=jnp.bfloat16):
    """y = epi( pro(A) @ W + bias ), bf16 MXU inputs, f32 accumulation.

    pro(A): per-column affine (col_scale, col_shift) + {none|relu|leaky0.2} on the
            im2col matrix A (rows = N*Ho*Wo, cols = K*K*Cin).
    epi   : +bias then {none|tanh}.
    If with_stats, also returns per-output-column sum and sum-of-squares of the
    pre-bias matmul result (fused BatchNorm batch statistics, f32).
    Output columns are padded to a multiple of 128 for lane-dense stores and
    sliced back to Nc before returning.
    """
    M, Kc = a.shape
    Nc = wm.shape[1]
    Np = _round_up(Nc, 128)                 # lane-dense output stores
    tm = min(1024, _round_up(M, 8))
    grid = pl.cdiv(M, tm)
    Mp = grid * tm
    pad_rows = Mp != M
    if pad_rows:
        a = jnp.pad(a, ((0, Mp - M), (0, 0)))
    if Np != Nc:
        wm = jnp.pad(wm, ((0, 0), (0, Np - Nc)))
        bias = jnp.pad(bias, (0, Np - Nc))

    wm = wm.astype(jnp.bfloat16)
    col_scale = col_scale.reshape(1, Kc).astype(jnp.float32)
    col_shift = col_shift.reshape(1, Kc).astype(jnp.float32)
    bias = bias.reshape(1, Np).astype(jnp.float32)

    def kernel(a_ref, w_ref, sc_ref, sh_ref, b_ref, *out_refs):
        o_ref = out_refs[0]
        # fused prologue: BN affine + activation on the im2col tile (VPU, hidden
        # under the MXU), so no standalone elementwise pass over the activation.
        at = a_ref[...] * sc_ref[...] + sh_ref[...]
        if prologue_act == "leaky":
            at = jnp.where(at > 0, at, 0.2 * at)
        elif prologue_act == "relu":
            at = jnp.maximum(at, 0.0)
        if pad_rows and with_stats:
            rows = (pl.program_id(0) * tm
                    + jax.lax.broadcasted_iota(jnp.int32, (tm, 1), 0))
            at = jnp.where(rows < M, at, 0.0)   # keep padded rows out of the stats
        acc = jnp.dot(at.astype(jnp.bfloat16), w_ref[...],
                      preferred_element_type=jnp.float32)
        if with_stats:
            st_ref = out_refs[1]
            cs = jnp.sum(acc, axis=0, keepdims=True)
            sq = jnp.sum(acc * acc, axis=0, keepdims=True)
            st_ref[...] = jnp.concatenate([cs, sq], axis=0)[None]
        acc = acc + b_ref[...]
        if epilogue_act == "tanh":
            acc = jnp.tanh(acc)
        o_ref[...] = acc.astype(o_ref.dtype)

    out_shapes = [jax.ShapeDtypeStruct((Mp, Np), out_dtype)]
    out_specs = [pl.BlockSpec((tm, Np), lambda i: (i, 0))]
    if with_stats:
        out_shapes.append(jax.ShapeDtypeStruct((grid, 2, Np), jnp.float32))
        out_specs.append(pl.BlockSpec((1, 2, Np), lambda i: (i, 0, 0)))

    res = pl.pallas_call(
        kernel,
        out_shape=tuple(out_shapes),
        grid_spec=pltpu.PrefetchScalarGridSpec(
            num_scalar_prefetch=0,
            grid=(grid,),
            in_specs=[
                pl.BlockSpec((tm, Kc), lambda i: (i, 0)),
                pl.BlockSpec((Kc, Np), lambda i: (0, 0)),
                pl.BlockSpec((1, Kc), lambda i: (0, 0)),
                pl.BlockSpec((1, Kc), lambda i: (0, 0)),
                pl.BlockSpec((1, Np), lambda i: (0, 0)),
            ],
            out_specs=out_specs,
        ),
        compiler_params=pltpu.CompilerParams(
            dimension_semantics=("parallel",),
            vmem_limit_bytes=32 * 1024 * 1024,
        ),
    )(a, wm, col_scale, col_shift, bias)

    y = res[0][:M, :Nc]
    if with_stats:
        st = res[1]
        return y, st[:, 0, :Nc].sum(axis=0), st[:, 1, :Nc].sum(axis=0)
    return y, None, None


# ----------------------------------------------------------------- conv layers --

def _im2col(xs, K, stride, pad):
    """im2col over a (channel-concatenated) list of NHWC tensors (bf16).

    Columns ordered (kh, kw, concatenated-channel), so the skip-connection
    torch.cat is realized here and never materialized as a separate copy."""
    N, H, W = xs[0].shape[:3]
    Hp, Wp = H + 2 * pad, W + 2 * pad
    Ho = (Hp - K) // stride + 1
    Wo = (Wp - K) // stride + 1
    xps = [jnp.pad(x, ((0, 0), (pad, pad), (pad, pad), (0, 0))) for x in xs]
    cols = []
    for dh in range(K):
        for dw in range(K):
            for xp in xps:
                cols.append(xp[:, dh:dh + stride * Ho:stride,
                               dw:dw + stride * Wo:stride, :])
    patches = jnp.concatenate(cols, axis=-1)
    return patches.reshape(N * Ho * Wo, -1), (N, Ho, Wo)


def _col_vec(per_channel, taps):
    return jnp.tile(jnp.concatenate(per_channel), taps)


def conv_down(xs, w, ch_scale, ch_shift, prologue_act, with_stats,
              out_dtype=jnp.bfloat16):
    """Conv2d(kernel=4, stride=2, pad=1, bias=False) with fused per-channel
    affine + activation prologue and optional fused BatchNorm statistics."""
    Cout, Cin, K, _ = w.shape
    a, (N, Ho, Wo) = _im2col(xs, K, 2, 1)
    wm = jnp.transpose(w, (2, 3, 1, 0)).reshape(K * K * Cin, Cout)
    y, cs, sq = fused_gemm(
        a, wm, _col_vec(ch_scale, K * K), _col_vec(ch_shift, K * K),
        jnp.zeros((Cout,), jnp.float32),
        prologue_act=prologue_act, epilogue_act="none",
        with_stats=with_stats, out_dtype=out_dtype)
    return y.reshape(N, Ho, Wo, Cout), cs, sq


def _convt_as_3x3_matrix(w_t):
    """ConvTranspose2d(k=4, s=2, p=1) weight (Cin, Cout, 4, 4) -> equivalent
    3x3 stride-1 pad-1 conv matrix (9*Cin, 4*Cout); the 4*Cout output columns
    are the 4 sub-pixel phases (r, s) of the upsampled output."""
    Cin, Cout = w_t.shape[0], w_t.shape[1]
    tap = {(0, 0): 3, (0, 1): 1, (1, 1): 2, (1, 2): 0}  # (phase, patch-offset)->kernel tap
    zero = jnp.zeros((Cin, Cout), w_t.dtype)
    rows = []
    for dh in range(3):
        for dw in range(3):
            cols = []
            for r in range(2):
                for s in range(2):
                    kh = tap.get((r, dh))
                    kw = tap.get((s, dw))
                    cols.append(zero if kh is None or kw is None
                                else w_t[:, :, kh, kw])
            rows.append(jnp.concatenate(cols, axis=1))
    return jnp.concatenate(rows, axis=0)


def convt_up(xs, w_t, ch_scale, ch_shift, prologue_act, with_stats,
             bias=None, epilogue_act="none", out_dtype=jnp.bfloat16):
    """ConvTranspose2d(kernel=4, stride=2, pad=1) via sub-pixel decomposition:
    one 3x3 stride-1 GEMM producing 4*Cout phase channels + depth-to-space."""
    Cout = w_t.shape[1]
    a, (N, Hi, Wi) = _im2col(xs, 3, 1, 1)
    w2 = _convt_as_3x3_matrix(w_t)
    b = (jnp.tile(bias, 4) if bias is not None
         else jnp.zeros((4 * Cout,), jnp.float32))
    y, cs, sq = fused_gemm(
        a, w2, _col_vec(ch_scale, 9), _col_vec(ch_shift, 9), b,
        prologue_act=prologue_act, epilogue_act=epilogue_act,
        with_stats=with_stats, out_dtype=out_dtype)
    y = y.reshape(N, Hi, Wi, 2, 2, Cout)
    y = jnp.transpose(y, (0, 1, 3, 2, 4, 5)).reshape(N, 2 * Hi, 2 * Wi, Cout)
    return y, cs, sq


def bn_affine_from_stats(colsum, colsumsq, count, gamma, beta, phases=1, eps=1e-5):
    """Training-mode BatchNorm2d (batch stats, biased variance) as a per-channel
    (scale, shift) pair, fused later into the consumer GEMM's prologue."""
    if phases > 1:
        C = gamma.shape[0]
        colsum = colsum.reshape(phases, C).sum(axis=0)
        colsumsq = colsumsq.reshape(phases, C).sum(axis=0)
        count = count * phases
    mean = colsum / count
    var = jnp.maximum(colsumsq / count - mean * mean, 0.0)
    scale = gamma / jnp.sqrt(var + eps)
    shift = beta - mean * scale
    return scale, shift


# ---------------------------------------------------------------------- model --

def init_params(key, input_nc, output_nc, ngf):
    ks = iter(jax.random.split(key, 32))

    def w(shape, s=0.05):
        return s * jax.random.normal(next(ks), shape, jnp.float32)

    def bn(c):
        g = 1.0 + 0.1 * jax.random.normal(next(ks), (c,), jnp.float32)
        b = 0.1 * jax.random.normal(next(ks), (c,), jnp.float32)
        return g, b

    p = {}
    p["w_d1"] = w((ngf, input_nc, 4, 4))                          # outermost down (no bias)
    p["w_d2"] = w((2 * ngf, ngf, 4, 4)); p["g_d2"], p["b_d2"] = bn(2 * ngf)
    p["w_d3"] = w((4 * ngf, 2 * ngf, 4, 4))                        # innermost down (no norm)
    p["w_u3"] = w((4 * ngf, 2 * ngf, 4, 4)); p["g_u3"], p["b_u3"] = bn(2 * ngf)
    p["w_u2"] = w((4 * ngf, ngf, 4, 4)); p["g_u2"], p["b_u2"] = bn(ngf)
    p["w_u1"] = w((2 * ngf, output_nc, 4, 4)); p["b_u1"] = w((output_nc,))  # outermost up (bias)
    return p


def unet_forward(x_nchw, p):
    """outermost( middle( innermost ) ) UnetSkipConnectionBlock stack."""
    ngf = p["w_d1"].shape[0]
    # bf16 activations end-to-end (MXU inputs are bf16 anyway); f32 accum/stats.
    x = jnp.transpose(x_nchw, (0, 2, 3, 1)).astype(jnp.bfloat16)
    cin = x.shape[-1]
    one = lambda c: jnp.ones((c,), jnp.float32)
    nil = lambda c: jnp.zeros((c,), jnp.float32)

    # outermost down: Conv(input_nc -> ngf), no norm, no pre-activation
    d1, _, _ = conv_down([x], p["w_d1"], [one(cin)], [nil(cin)], "none", False)

    # middle down: LeakyReLU -> Conv(ngf -> 2ngf) -> BN (stats fused in the GEMM)
    d2, s2, q2 = conv_down([d1], p["w_d2"], [one(ngf)], [nil(ngf)], "leaky", True)
    m2 = d2.shape[0] * d2.shape[1] * d2.shape[2]
    sc2, sh2 = bn_affine_from_stats(s2, q2, m2, p["g_d2"], p["b_d2"])

    # innermost down: LeakyReLU(BN(d2)) -> Conv(2ngf -> 4ngf)   (BN applied as prologue)
    d3, _, _ = conv_down([d2], p["w_d3"], [sc2], [sh2], "leaky", False)

    # innermost up: ReLU -> ConvT(4ngf -> 2ngf) -> BN (stats fused)
    u3, s3, q3 = convt_up([d3], p["w_u3"], [one(4 * ngf)], [nil(4 * ngf)], "relu", True)
    m3 = d3.shape[0] * d3.shape[1] * d3.shape[2]
    sc3, sh3 = bn_affine_from_stats(s3, q3, m3, p["g_u3"], p["b_u3"], phases=4)

    # middle up: ReLU(cat[BN(d2), BN(u3)]) -> ConvT(4ngf -> ngf) -> BN (stats fused);
    # skip-concat + both BN affines + ReLU are all folded into the GEMM prologue.
    u2, s4, q4 = convt_up([d2, u3], p["w_u2"], [sc2, sc3], [sh2, sh3], "relu", True)
    m4 = d2.shape[0] * d2.shape[1] * d2.shape[2]
    sc4, sh4 = bn_affine_from_stats(s4, q4, m4, p["g_u2"], p["b_u2"], phases=4)

    # outermost up: ReLU(cat[d1, BN(u2)]) -> ConvT(2ngf -> output_nc, bias) -> Tanh
    y, _, _ = convt_up([d1, u2], p["w_u1"], [one(ngf), sc4], [nil(ngf), sh4],
                       "relu", False, bias=p["b_u1"], epilogue_act="tanh",
                       out_dtype=jnp.float32)

    return jnp.transpose(y, (0, 3, 1, 2))


# ----------------------------------------------------------------------- main --

if __name__ == "__main__":
    key = jax.random.PRNGKey(0)
    N, input_nc, H, W = 2, 4, 16, 16
    output_nc, ngf = 4, 8

    params = init_params(key, input_nc, output_nc, ngf)
    x = jax.random.normal(jax.random.fold_in(key, 1), (N, input_nc, H, W),
                          jnp.float32)

    fwd = jax.jit(unet_forward)
    y = fwd(x, params)
    jax.block_until_ready(y)

    assert y.shape == (N, output_nc, H, W), y.shape
    assert bool(jnp.all(jnp.isfinite(y)))
    assert bool(jnp.all(jnp.abs(y) <= 1.0 + 1e-6))  # outermost block ends in tanh
    print("KERNEL_OK")
</pallas_src>

<mosaic_0001>
module attributes {stable_mosaic.version = 11 : i64} {
  func.func @kernel(%arg0: i32, %arg1: memref<128x64xbf16, #tpu.memory_space<vmem>>, %arg2: memref<64x128xbf16, #tpu.memory_space<vmem>>, %arg3: memref<1x64xf32, #tpu.memory_space<vmem>>, %arg4: memref<1x64xf32, #tpu.memory_space<vmem>>, %arg5: memref<1x128xf32, #tpu.memory_space<vmem>>, %arg6: memref<128x128xbf16, #tpu.memory_space<vmem>>) attributes {dimension_semantics = [#tpu.dimension_semantics<parallel>], iteration_bounds = array<i64: 1>, scalar_prefetch = 0 : i64, scratch_operands = 0 : i64, tpu.core_type = #tpu.core_type<tc>, window_params = [{transform_indices = @transform_0, window_bounds = array<i64: 128, 64>}, {pipeline_mode = #tpu.pipeline_mode<synchronous>, transform_indices = @transform_1, window_bounds = array<i64: 64, 128>}, {pipeline_mode = #tpu.pipeline_mode<synchronous>, transform_indices = @transform_2, window_bounds = array<i64: 1, 64>}, {pipeline_mode = #tpu.pipeline_mode<synchronous>, transform_indices = @transform_3, window_bounds = array<i64: 1, 64>}, {pipeline_mode = #tpu.pipeline_mode<synchronous>, transform_indices = @transform_4, window_bounds = array<i64: 1, 128>}, {transform_indices = @transform_5, window_bounds = array<i64: 128, 128>}]} {
    %c0 = arith.constant 0 : index
    %c0_0 = arith.constant 0 : index
    %0 = vector.load %arg1[%c0, %c0_0] : memref<128x64xbf16, #tpu.memory_space<vmem>>, vector<128x64xbf16>
    %c0_1 = arith.constant 0 : index
    %c0_2 = arith.constant 0 : index
    %1 = vector.load %arg3[%c0_1, %c0_2] : memref<1x64xf32, #tpu.memory_space<vmem>>, vector<1x64xf32>
    %2 = arith.extf %0 : vector<128x64xbf16> to vector<128x64xf32>
    %3 = vector.broadcast %1 : vector<1x64xf32> to vector<128x64xf32>
    %4 = arith.mulf %2, %3 : vector<128x64xf32>
    %c0_3 = arith.constant 0 : index
    %c0_4 = arith.constant 0 : index
    %5 = vector.load %arg4[%c0_3, %c0_4] : memref<1x64xf32, #tpu.memory_space<vmem>>, vector<1x64xf32>
    %6 = vector.broadcast %5 : vector<1x64xf32> to vector<128x64xf32>
    %7 = arith.addf %4, %6 : vector<128x64xf32>
    %8 = arith.truncf %7 : vector<128x64xf32> to vector<128x64xbf16>
    %c0_5 = arith.constant 0 : index
    %c0_6 = arith.constant 0 : index
    %9 = vector.load %arg2[%c0_5, %c0_6] : memref<64x128xbf16, #tpu.memory_space<vmem>>, vector<64x128xbf16>
    %cst = arith.constant dense<0.000000e+00> : vector<128x128xf32>
    %10 = tpu.matmul %8, %9, %cst {dimension_numbers = #tpu.dot_dimension_numbers<[1], [0], [0], [1], [0, 0, 1, 1], [], []>} : vector<128x64xbf16>, vector<64x128xbf16>, vector<128x128xf32> -> vector<128x128xf32>
    %c0_7 = arith.constant 0 : index
    %c0_8 = arith.constant 0 : index
    %11 = vector.load %arg5[%c0_7, %c0_8] : memref<1x128xf32, #tpu.memory_space<vmem>>, vector<1x128xf32>
    %12 = vector.broadcast %11 : vector<1x128xf32> to vector<128x128xf32>
    %13 = arith.addf %10, %12 : vector<128x128xf32>
    %14 = arith.truncf %13 : vector<128x128xf32> to vector<128x128xbf16>
    %c0_9 = arith.constant 0 : index
    %c0_10 = arith.constant 0 : index
    %15 = vector.load %arg6[%c0_9, %c0_10] : memref<128x128xbf16, #tpu.memory_space<vmem>>, vector<128x128xbf16>
    tpu.vector_store %arg6[%c0_9, %c0_10], %14 {strides = array<i32>} : memref<128x128xbf16, #tpu.memory_space<vmem>>, vector<128x128xbf16>,
    return
  }
  func.func @transform_0(%arg0: i32) -> (i32, i32) {
    %c0_i32 = arith.constant 0 : i32
    %c0_i32_0 = arith.constant 0 : i32
    return %arg0, %c0_i32 : i32, i32
  }
  func.func @transform_1(%arg0: i32) -> (i32, i32) {
    %c0_i32 = arith.constant 0 : i32
    %c0_i32_0 = arith.constant 0 : i32
    %c0_i32_1 = arith.constant 0 : i32
    return %c0_i32, %c0_i32_0 : i32, i32
  }
  func.func @transform_2(%arg0: i32) -> (i32, i32) {
    %c0_i32 = arith.constant 0 : i32
    %c0_i32_0 = arith.constant 0 : i32
    %c0_i32_1 = arith.constant 0 : i32
    return %c0_i32, %c0_i32_0 : i32, i32
  }
  func.func @transform_3(%arg0: i32) -> (i32, i32) {
    %c0_i32 = arith.constant 0 : i32
    %c0_i32_0 = arith.constant 0 : i32
    %c0_i32_1 = arith.constant 0 : i32
    return %c0_i32, %c0_i32_0 : i32, i32
  }
  func.func @transform_4(%arg0: i32) -> (i32, i32) {
    %c0_i32 = arith.constant 0 : i32
    %c0_i32_0 = arith.constant 0 : i32
    %c0_i32_1 = arith.constant 0 : i32
    return %c0_i32, %c0_i32_0 : i32, i32
  }
  func.func @transform_5(%arg0: i32) -> (i32, i32) {
    %c0_i32 = arith.constant 0 : i32
    %c0_i32_0 = arith.constant 0 : i32
    return %arg0, %c0_i32 : i32, i32
  }
}

module attributes {stable_mosaic.version = 11 : i64} {
  func.func @kernel(%arg0: i32, %arg1: memref<32x128xbf16, #tpu.memory_space<vmem>>, %arg2: memref<128x128xbf16, #tpu.memory_space<vmem>>, %arg3: memref<1x128xf32, #tpu.memory_space<vmem>>, %arg4: memref<1x128xf32, #tpu.memory_space<vmem>>, %arg5: memref<1x128xf32, #tpu.memory_space<vmem>>, %arg6: memref<32x128xbf16, #tpu.memory_space<vmem>>, %arg7: memref<1x2x128xf32, #tpu.memory_space<vmem>>) attributes {dimension_semantics = [#tpu.dimension_semantics<parallel>], iteration_bounds = array<i64: 1>, scalar_prefetch = 0 : i64, scratch_operands = 0 : i64, tpu.core_type = #tpu.core_type<tc>, window_params = [{transform_indices = @transform_0, window_bounds = array<i64: 32, 128>}, {pipeline_mode = #tpu.pipeline_mode<synchronous>, transform_indices = @transform_1, window_bounds = array<i64: 128, 128>}, {pipeline_mode = #tpu.pipeline_mode<synchronous>, transform_indices = @transform_2, window_bounds = array<i64: 1, 128>}, {pipeline_mode = #tpu.pipeline_mode<synchronous>, transform_indices = @transform_3, window_bounds = array<i64: 1, 128>}, {pipeline_mode = #tpu.pipeline_mode<synchronous>, transform_indices = @transform_4, window_bounds = array<i64: 1, 128>}, {transform_indices = @transform_5, window_bounds = array<i64: 32, 128>}, {transform_indices = @transform_6, window_bounds = array<i64: 1, 2, 128>}]} {
    %c0 = arith.constant 0 : index
    %c0_0 = arith.constant 0 : index
    %0 = vector.load %arg1[%c0, %c0_0] : memref<32x128xbf16, #tpu.memory_space<vmem>>, vector<32x128xbf16>
    %c0_1 = arith.constant 0 : index
    %c0_2 = arith.constant 0 : index
    %1 = vector.load %arg3[%c0_1, %c0_2] : memref<1x128xf32, #tpu.memory_space<vmem>>, vector<1x128xf32>
    %2 = arith.extf %0 : vector<32x128xbf16> to vector<32x128xf32>
    %3 = vector.broadcast %1 : vector<1x128xf32> to vector<32x128xf32>
    %4 = arith.mulf %2, %3 : vector<32x128xf32>
    %c0_3 = arith.constant 0 : index
    %c0_4 = arith.constant 0 : index
    %5 = vector.load %arg4[%c0_3, %c0_4] : memref<1x128xf32, #tpu.memory_space<vmem>>, vector<1x128xf32>
    %6 = vector.broadcast %5 : vector<1x128xf32> to vector<32x128xf32>
    %7 = arith.addf %4, %6 : vector<32x128xf32>
    %cst = arith.constant 0.000000e+00 : f32
    %8 = vector.broadcast %cst : f32 to vector<32x128xf32>
    %9 = arith.cmpf ogt, %7, %8 : vector<32x128xf32>
    %cst_5 = arith.constant 2.000000e-01 : f32
    %10 = vector.broadcast %cst_5 : f32 to vector<32x128xf32>
    %11 = arith.mulf %10, %7 : vector<32x128xf32>
    %12 = arith.select %9, %7, %11 : vector<32x128xi1>, vector<32x128xf32>
    %13 = arith.truncf %12 : vector<32x128xf32> to vector<32x128xbf16>
    %c0_6 = arith.constant 0 : index
    %c0_7 = arith.constant 0 : index
    %14 = vector.load %arg2[%c0_6, %c0_7] : memref<128x128xbf16, #tpu.memory_space<vmem>>, vector<128x128xbf16>
    %cst_8 = arith.constant dense<0.000000e+00> : vector<32x128xf32>
    %15 = tpu.matmul %13, %14, %cst_8 {dimension_numbers = #tpu.dot_dimension_numbers<[1], [0], [0], [1], [0, 0, 1, 1], [], []>} : vector<32x128xbf16>, vector<128x128xbf16>, vector<32x128xf32> -> vector<32x128xf32>
    %cst_9 = arith.constant dense<0.000000e+00> : vector<128xf32>
    %16 = vector.multi_reduction <add>, %15, %cst_9 [0] : vector<32x128xf32> to vector<128xf32>
    %17 = vector.shape_cast %16 : vector<128xf32> to vector<1x128xf32>
    %18 = arith.mulf %15, %15 : vector<32x128xf32>
    %cst_10 = arith.constant dense<0.000000e+00> : vector<128xf32>
    %19 = vector.multi_reduction <add>, %18, %cst_10 [0] : vector<32x128xf32> to vector<128xf32>
    %20 = vector.shape_cast %19 : vector<128xf32> to vector<1x128xf32>
    %21 = tpu.concatenate %17, %20 in 0 : vector<1x128xf32>, vector<1x128xf32> -> vector<2x128xf32>
    %22 = vector.shape_cast %21 : vector<2x128xf32> to vector<1x2x128xf32>
    %c0_11 = arith.constant 0 : index
    %c0_12 = arith.constant 0 : index
    %c0_13 = arith.constant 0 : index
    %23 = vector.load %arg7[%c0_11, %c0_12, %c0_13] : memref<1x2x128xf32, #tpu.memory_space<vmem>>, vector<1x2x128xf32>
    tpu.vector_store %arg7[%c0_11, %c0_12, %c0_13], %22 {strides = array<i32>} : memref<1x2x128xf32, #tpu.memory_space<vmem>>, vector<1x2x128xf32>,
    %c0_14 = arith.constant 0 : index
    %c0_15 = arith.constant 0 : index
    %24 = vector.load %arg5[%c0_14, %c0_15] : memref<1x128xf32, #tpu.memory_space<vmem>>, vector<1x128xf32>
    %25 = vector.broadcast %24 : vector<1x128xf32> to vector<32x128xf32>
    %26 = arith.addf %15, %25 : vector<32x128xf32>
    %27 = arith.truncf %26 : vector<32x128xf32> to vector<32x128xbf16>
    %c0_16 = arith.constant 0 : index
    %c0_17 = arith.constant 0 : index
    %28 = vector.load %arg6[%c0_16, %c0_17] : memref<32x128xbf16, #tpu.memory_space<vmem>>, vector<32x128xbf16>
    tpu.vector_store %arg6[%c0_16, %c0_17], %27 {strides = array<i32>} : memref<32x128xbf16, #tpu.memory_space<vmem>>, vector<32x128xbf16>,
    return
  }
  func.func @transform_0(%arg0: i32) -> (i32, i32) {
    %c0_i32 = arith.constant 0 : i32
    %c0_i32_0 = arith.constant 0 : i32
    return %arg0, %c0_i32 : i32, i32
  }
  func.func @transform_1(%arg0: i32) -> (i32, i32) {
    %c0_i32 = arith.constant 0 : i32
    %c0_i32_0 = arith.constant 0 : i32
    %c0_i32_1 = arith.constant 0 : i32
    return %c0_i32, %c0_i32_0 : i32, i32
  }
  func.func @transform_2(%arg0: i32) -> (i32, i32) {
    %c0_i32 = arith.constant 0 : i32
    %c0_i32_0 = arith.constant 0 : i32
    %c0_i32_1 = arith.constant 0 : i32
    return %c0_i32, %c0_i32_0 : i32, i32
  }
  func.func @transform_3(%arg0: i32) -> (i32, i32) {
    %c0_i32 = arith.constant 0 : i32
    %c0_i32_0 = arith.constant 0 : i32
    %c0_i32_1 = arith.constant 0 : i32
    return %c0_i32, %c0_i32_0 : i32, i32
  }
  func.func @transform_4(%arg0: i32) -> (i32, i32) {
    %c0_i32 = arith.constant 0 : i32
    %c0_i32_0 = arith.constant 0 : i32
    %c0_i32_1 = arith.constant 0 : i32
    return %c0_i32, %c0_i32_0 : i32, i32
  }
  func.func @transform_5(%arg0: i32) -> (i32, i32) {
    %c0_i32 = arith.constant 0 : i32
    %c0_i32_0 = arith.constant 0 : i32
    return %arg0, %c0_i32 : i32, i32
  }
  func.func @transform_6(%arg0: i32) -> (i32, i32, i32) {
    %c0_i32 = arith.constant 0 : i32
    %c0_i32_0 = arith.constant 0 : i32
    %c0_i32_1 = arith.constant 0 : i32
    return %arg0, %c0_i32, %c0_i32_0 : i32, i32, i32
  }
}

module attributes {stable_mosaic.version = 11 : i64} {
  func.func @kernel(%arg0: i32, %arg1: memref<8x256xbf16, #tpu.memory_space<vmem>>, %arg2: memref<256x128xbf16, #tpu.memory_space<vmem>>, %arg3: memref<1x256xf32, #tpu.memory_space<vmem>>, %arg4: memref<1x256xf32, #tpu.memory_space<vmem>>, %arg5: memref<1x128xf32, #tpu.memory_space<vmem>>, %arg6: memref<8x128xbf16, #tpu.memory_space<vmem>>) attributes {dimension_semantics = [#tpu.dimension_semantics<parallel>], iteration_bounds = array<i64: 1>, scalar_prefetch = 0 : i64, scratch_operands = 0 : i64, tpu.core_type = #tpu.core_type<tc>, window_params = [{transform_indices = @transform_0, window_bounds = array<i64: 8, 256>}, {pipeline_mode = #tpu.pipeline_mode<synchronous>, transform_indices = @transform_1, window_bounds = array<i64: 256, 128>}, {pipeline_mode = #tpu.pipeline_mode<synchronous>, transform_indices = @transform_2, window_bounds = array<i64: 1, 256>}, {pipeline_mode = #tpu.pipeline_mode<synchronous>, transform_indices = @transform_3, window_bounds = array<i64: 1, 256>}, {pipeline_mode = #tpu.pipeline_mode<synchronous>, transform_indices = @transform_4, window_bounds = array<i64: 1, 128>}, {transform_indices = @transform_5, window_bounds = array<i64: 8, 128>}]} {
    %c0 = arith.constant 0 : index
    %c0_0 = arith.constant 0 : index
    %0 = vector.load %arg1[%c0, %c0_0] : memref<8x256xbf16, #tpu.memory_space<vmem>>, vector<8x256xbf16>
    %c0_1 = arith.constant 0 : index
    %c0_2 = arith.constant 0 : index
    %1 = vector.load %arg3[%c0_1, %c0_2] : memref<1x256xf32, #tpu.memory_space<vmem>>, vector<1x256xf32>
    %2 = arith.extf %0 : vector<8x256xbf16> to vector<8x256xf32>
    %3 = vector.broadcast %1 : vector<1x256xf32> to vector<8x256xf32>
    %4 = arith.mulf %2, %3 : vector<8x256xf32>
    %c0_3 = arith.constant 0 : index
    %c0_4 = arith.constant 0 : index
    %5 = vector.load %arg4[%c0_3, %c0_4] : memref<1x256xf32, #tpu.memory_space<vmem>>, vector<1x256xf32>
    %6 = vector.broadcast %5 : vector<1x256xf32> to vector<8x256xf32>
    %7 = arith.addf %4, %6 : vector<8x256xf32>
    %cst = arith.constant 0.000000e+00 : f32
    %8 = vector.broadcast %cst : f32 to vector<8x256xf32>
    %9 = arith.cmpf ogt, %7, %8 : vector<8x256xf32>
    %cst_5 = arith.constant 2.000000e-01 : f32
    %10 = vector.broadcast %cst_5 : f32 to vector<8x256xf32>
    %11 = arith.mulf %10, %7 : vector<8x256xf32>
    %12 = arith.select %9, %7, %11 : vector<8x256xi1>, vector<8x256xf32>
    %13 = arith.truncf %12 : vector<8x256xf32> to vector<8x256xbf16>
    %c0_6 = arith.constant 0 : index
    %c0_7 = arith.constant 0 : index
    %14 = vector.load %arg2[%c0_6, %c0_7] : memref<256x128xbf16, #tpu.memory_space<vmem>>, vector<256x128xbf16>
    %cst_8 = arith.constant dense<0.000000e+00> : vector<8x128xf32>
    %15 = tpu.matmul %13, %14, %cst_8 {dimension_numbers = #tpu.dot_dimension_numbers<[1], [0], [0], [1], [0, 0, 1, 1], [], []>} : vector<8x256xbf16>, vector<256x128xbf16>, vector<8x128xf32> -> vector<8x128xf32>
    %c0_9 = arith.constant 0 : index
    %c0_10 = arith.constant 0 : index
    %16 = vector.load %arg5[%c0_9, %c0_10] : memref<1x128xf32, #tpu.memory_space<vmem>>, vector<1x128xf32>
    %17 = vector.broadcast %16 : vector<1x128xf32> to vector<8x128xf32>
    %18 = arith.addf %15, %17 : vector<8x128xf32>
    %19 = arith.truncf %18 : vector<8x128xf32> to vector<8x128xbf16>
    %c0_11 = arith.constant 0 : index
    %c0_12 = arith.constant 0 : index
    %20 = vector.load %arg6[%c0_11, %c0_12] : memref<8x128xbf16, #tpu.memory_space<vmem>>, vector<8x128xbf16>
    tpu.vector_store %arg6[%c0_11, %c0_12], %19 {strides = array<i32>} : memref<8x128xbf16, #tpu.memory_space<vmem>>, vector<8x128xbf16>,
    return
  }
  func.func @transform_0(%arg0: i32) -> (i32, i32) {
    %c0_i32 = arith.constant 0 : i32
    %c0_i32_0 = arith.constant 0 : i32
    return %arg0, %c0_i32 : i32, i32
  }
  func.func @transform_1(%arg0: i32) -> (i32, i32) {
    %c0_i32 = arith.constant 0 : i32
    %c0_i32_0 = arith.constant 0 : i32
    %c0_i32_1 = arith.constant 0 : i32
    return %c0_i32, %c0_i32_0 : i32, i32
  }
  func.func @transform_2(%arg0: i32) -> (i32, i32) {
    %c0_i32 = arith.constant 0 : i32
    %c0_i32_0 = arith.constant 0 : i32
    %c0_i32_1 = arith.constant 0 : i32
    return %c0_i32, %c0_i32_0 : i32, i32
  }
  func.func @transform_3(%arg0: i32) -> (i32, i32) {
    %c0_i32 = arith.constant 0 : i32
    %c0_i32_0 = arith.constant 0 : i32
    %c0_i32_1 = arith.constant 0 : i32
    return %c0_i32, %c0_i32_0 : i32, i32
  }
  func.func @transform_4(%arg0: i32) -> (i32, i32) {
    %c0_i32 = arith.constant 0 : i32
    %c0_i32_0 = arith.constant 0 : i32
    %c0_i32_1 = arith.constant 0 : i32
    return %c0_i32, %c0_i32_0 : i32, i32
  }
  func.func @transform_5(%arg0: i32) -> (i32, i32) {
    %c0_i32 = arith.constant 0 : i32
    %c0_i32_0 = arith.constant 0 : i32
    return %arg0, %c0_i32 : i32, i32
  }
}

module attributes {stable_mosaic.version = 11 : i64} {
  func.func @kernel(%arg0: i32, %arg1: memref<8x288xbf16, #tpu.memory_space<vmem>>, %arg2: memref<288x128xbf16, #tpu.memory_space<vmem>>, %arg3: memref<1x288xf32, #tpu.memory_space<vmem>>, %arg4: memref<1x288xf32, #tpu.memory_space<vmem>>, %arg5: memref<1x128xf32, #tpu.memory_space<vmem>>, %arg6: memref<8x128xbf16, #tpu.memory_space<vmem>>, %arg7: memref<1x2x128xf32, #tpu.memory_space<vmem>>) attributes {dimension_semantics = [#tpu.dimension_semantics<parallel>], iteration_bounds = array<i64: 1>, scalar_prefetch = 0 : i64, scratch_operands = 0 : i64, tpu.core_type = #tpu.core_type<tc>, window_params = [{transform_indices = @transform_0, window_bounds = array<i64: 8, 288>}, {pipeline_mode = #tpu.pipeline_mode<synchronous>, transform_indices = @transform_1, window_bounds = array<i64: 288, 128>}, {pipeline_mode = #tpu.pipeline_mode<synchronous>, transform_indices = @transform_2, window_bounds = array<i64: 1, 288>}, {pipeline_mode = #tpu.pipeline_mode<synchronous>, transform_indices = @transform_3, window_bounds = array<i64: 1, 288>}, {pipeline_mode = #tpu.pipeline_mode<synchronous>, transform_indices = @transform_4, window_bounds = array<i64: 1, 128>}, {transform_indices = @transform_5, window_bounds = array<i64: 8, 128>}, {transform_indices = @transform_6, window_bounds = array<i64: 1, 2, 128>}]} {
    %c0 = arith.constant 0 : index
    %c0_0 = arith.constant 0 : index
    %0 = vector.load %arg1[%c0, %c0_0] : memref<8x288xbf16, #tpu.memory_space<vmem>>, vector<8x288xbf16>
    %c0_1 = arith.constant 0 : index
    %c0_2 = arith.constant 0 : index
    %1 = vector.load %arg3[%c0_1, %c0_2] : memref<1x288xf32, #tpu.memory_space<vmem>>, vector<1x288xf32>
    %2 = arith.extf %0 : vector<8x288xbf16> to vector<8x288xf32>
    %3 = vector.broadcast %1 : vector<1x288xf32> to vector<8x288xf32>
    %4 = arith.mulf %2, %3 : vector<8x288xf32>
    %c0_3 = arith.constant 0 : index
    %c0_4 = arith.constant 0 : index
    %5 = vector.load %arg4[%c0_3, %c0_4] : memref<1x288xf32, #tpu.memory_space<vmem>>, vector<1x288xf32>
    %6 = vector.broadcast %5 : vector<1x288xf32> to vector<8x288xf32>
    %7 = arith.addf %4, %6 : vector<8x288xf32>
    %cst = arith.constant 0.000000e+00 : f32
    %8 = vector.broadcast %cst : f32 to vector<8x288xf32>
    %9 = arith.maximumf %7, %8 : vector<8x288xf32>
    %10 = arith.truncf %9 : vector<8x288xf32> to vector<8x288xbf16>
    %c0_5 = arith.constant 0 : index
    %c0_6 = arith.constant 0 : index
    %11 = vector.load %arg2[%c0_5, %c0_6] : memref<288x128xbf16, #tpu.memory_space<vmem>>, vector<288x128xbf16>
    %cst_7 = arith.constant dense<0.000000e+00> : vector<8x128xf32>
    %12 = tpu.matmul %10, %11, %cst_7 {dimension_numbers = #tpu.dot_dimension_numbers<[1], [0], [0], [1], [0, 0, 1, 1], [], []>} : vector<8x288xbf16>, vector<288x128xbf16>, vector<8x128xf32> -> vector<8x128xf32>
    %cst_8 = arith.constant dense<0.000000e+00> : vector<128xf32>
    %13 = vector.multi_reduction <add>, %12, %cst_8 [0] : vector<8x128xf32> to vector<128xf32>
    %14 = vector.shape_cast %13 : vector<128xf32> to vector<1x128xf32>
    %15 = arith.mulf %12, %12 : vector<8x128xf32>
    %cst_9 = arith.constant dense<0.000000e+00> : vector<128xf32>
    %16 = vector.multi_reduction <add>, %15, %cst_9 [0] : vector<8x128xf32> to vector<128xf32>
    %17 = vector.shape_cast %16 : vector<128xf32> to vector<1x128xf32>
    %18 = tpu.concatenate %14, %17 in 0 : vector<1x128xf32>, vector<1x128xf32> -> vector<2x128xf32>
    %19 = vector.shape_cast %18 : vector<2x128xf32> to vector<1x2x128xf32>
    %c0_10 = arith.constant 0 : index
    %c0_11 = arith.constant 0 : index
    %c0_12 = arith.constant 0 : index
    %20 = vector.load %arg7[%c0_10, %c0_11, %c0_12] : memref<1x2x128xf32, #tpu.memory_space<vmem>>, vector<1x2x128xf32>
    tpu.vector_store %arg7[%c0_10, %c0_11, %c0_12], %19 {strides = array<i32>} : memref<1x2x128xf32, #tpu.memory_space<vmem>>, vector<1x2x128xf32>,
    %c0_13 = arith.constant 0 : index
    %c0_14 = arith.constant 0 : index
    %21 = vector.load %arg5[%c0_13, %c0_14] : memref<1x128xf32, #tpu.memory_space<vmem>>, vector<1x128xf32>
    %22 = vector.broadcast %21 : vector<1x128xf32> to vector<8x128xf32>
    %23 = arith.addf %12, %22 : vector<8x128xf32>
    %24 = arith.truncf %23 : vector<8x128xf32> to vector<8x128xbf16>
    %c0_15 = arith.constant 0 : index
    %c0_16 = arith.constant 0 : index
    %25 = vector.load %arg6[%c0_15, %c0_16] : memref<8x128xbf16, #tpu.memory_space<vmem>>, vector<8x128xbf16>
    tpu.vector_store %arg6[%c0_15, %c0_16], %24 {strides = array<i32>} : memref<8x128xbf16, #tpu.memory_space<vmem>>, vector<8x128xbf16>,
    return
  }
  func.func @transform_0(%arg0: i32) -> (i32, i32) {
    %c0_i32 = arith.constant 0 : i32
    %c0_i32_0 = arith.constant 0 : i32
    return %arg0, %c0_i32 : i32, i32
  }
  func.func @transform_1(%arg0: i32) -> (i32, i32) {
    %c0_i32 = arith.constant 0 : i32
    %c0_i32_0 = arith.constant 0 : i32
    %c0_i32_1 = arith.constant 0 : i32
    return %c0_i32, %c0_i32_0 : i32, i32
  }
  func.func @transform_2(%arg0: i32) -> (i32, i32) {
    %c0_i32 = arith.constant 0 : i32
    %c0_i32_0 = arith.constant 0 : i32
    %c0_i32_1 = arith.constant 0 : i32
    return %c0_i32, %c0_i32_0 : i32, i32
  }
  func.func @transform_3(%arg0: i32) -> (i32, i32) {
    %c0_i32 = arith.constant 0 : i32
    %c0_i32_0 = arith.constant 0 : i32
    %c0_i32_1 = arith.constant 0 : i32
    return %c0_i32, %c0_i32_0 : i32, i32
  }
  func.func @transform_4(%arg0: i32) -> (i32, i32) {
    %c0_i32 = arith.constant 0 : i32
    %c0_i32_0 = arith.constant 0 : i32
    %c0_i32_1 = arith.constant 0 : i32
    return %c0_i32, %c0_i32_0 : i32, i32
  }
  func.func @transform_5(%arg0: i32) -> (i32, i32) {
    %c0_i32 = arith.constant 0 : i32
    %c0_i32_0 = arith.constant 0 : i32
    return %arg0, %c0_i32 : i32, i32
  }
  func.func @transform_6(%arg0: i32) -> (i32, i32, i32) {
    %c0_i32 = arith.constant 0 : i32
    %c0_i32_0 = arith.constant 0 : i32
    %c0_i32_1 = arith.constant 0 : i32
    return %arg0, %c0_i32, %c0_i32_0 : i32, i32, i32
  }
}

module attributes {stable_mosaic.version = 11 : i64} {
  func.func @kernel(%arg0: i32, %arg1: memref<32x288xbf16, #tpu.memory_space<vmem>>, %arg2: memref<288x128xbf16, #tpu.memory_space<vmem>>, %arg3: memref<1x288xf32, #tpu.memory_space<vmem>>, %arg4: memref<1x288xf32, #tpu.memory_space<vmem>>, %arg5: memref<1x128xf32, #tpu.memory_space<vmem>>, %arg6: memref<32x128xbf16, #tpu.memory_space<vmem>>, %arg7: memref<1x2x128xf32, #tpu.memory_space<vmem>>) attributes {dimension_semantics = [#tpu.dimension_semantics<parallel>], iteration_bounds = array<i64: 1>, scalar_prefetch = 0 : i64, scratch_operands = 0 : i64, tpu.core_type = #tpu.core_type<tc>, window_params = [{transform_indices = @transform_0, window_bounds = array<i64: 32, 288>}, {pipeline_mode = #tpu.pipeline_mode<synchronous>, transform_indices = @transform_1, window_bounds = array<i64: 288, 128>}, {pipeline_mode = #tpu.pipeline_mode<synchronous>, transform_indices = @transform_2, window_bounds = array<i64: 1, 288>}, {pipeline_mode = #tpu.pipeline_mode<synchronous>, transform_indices = @transform_3, window_bounds = array<i64: 1, 288>}, {pipeline_mode = #tpu.pipeline_mode<synchronous>, transform_indices = @transform_4, window_bounds = array<i64: 1, 128>}, {transform_indices = @transform_5, window_bounds = array<i64: 32, 128>}, {transform_indices = @transform_6, window_bounds = array<i64: 1, 2, 128>}]} {
    %c0 = arith.constant 0 : index
    %c0_0 = arith.constant 0 : index
    %0 = vector.load %arg1[%c0, %c0_0] : memref<32x288xbf16, #tpu.memory_space<vmem>>, vector<32x288xbf16>
    %c0_1 = arith.constant 0 : index
    %c0_2 = arith.constant 0 : index
    %1 = vector.load %arg3[%c0_1, %c0_2] : memref<1x288xf32, #tpu.memory_space<vmem>>, vector<1x288xf32>
    %2 = arith.extf %0 : vector<32x288xbf16> to vector<32x288xf32>
    %3 = vector.broadcast %1 : vector<1x288xf32> to vector<32x288xf32>
    %4 = arith.mulf %2, %3 : vector<32x288xf32>
    %c0_3 = arith.constant 0 : index
    %c0_4 = arith.constant 0 : index
    %5 = vector.load %arg4[%c0_3, %c0_4] : memref<1x288xf32, #tpu.memory_space<vmem>>, vector<1x288xf32>
    %6 = vector.broadcast %5 : vector<1x288xf32> to vector<32x288xf32>
    %7 = arith.addf %4, %6 : vector<32x288xf32>
    %cst = arith.constant 0.000000e+00 : f32
    %8 = vector.broadcast %cst : f32 to vector<32x288xf32>
    %9 = arith.maximumf %7, %8 : vector<32x288xf32>
    %10 = arith.truncf %9 : vector<32x288xf32> to vector<32x288xbf16>
    %c0_5 = arith.constant 0 : index
    %c0_6 = arith.constant 0 : index
    %11 = vector.load %arg2[%c0_5, %c0_6] : memref<288x128xbf16, #tpu.memory_space<vmem>>, vector<288x128xbf16>
    %cst_7 = arith.constant dense<0.000000e+00> : vector<32x128xf32>
    %12 = tpu.matmul %10, %11, %cst_7 {dimension_numbers = #tpu.dot_dimension_numbers<[1], [0], [0], [1], [0, 0, 1, 1], [], []>} : vector<32x288xbf16>, vector<288x128xbf16>, vector<32x128xf32> -> vector<32x128xf32>
    %cst_8 = arith.constant dense<0.000000e+00> : vector<128xf32>
    %13 = vector.multi_reduction <add>, %12, %cst_8 [0] : vector<32x128xf32> to vector<128xf32>
    %14 = vector.shape_cast %13 : vector<128xf32> to vector<1x128xf32>
    %15 = arith.mulf %12, %12 : vector<32x128xf32>
    %cst_9 = arith.constant dense<0.000000e+00> : vector<128xf32>
    %16 = vector.multi_reduction <add>, %15, %cst_9 [0] : vector<32x128xf32> to vector<128xf32>
    %17 = vector.shape_cast %16 : vector<128xf32> to vector<1x128xf32>
    %18 = tpu.concatenate %14, %17 in 0 : vector<1x128xf32>, vector<1x128xf32> -> vector<2x128xf32>
    %19 = vector.shape_cast %18 : vector<2x128xf32> to vector<1x2x128xf32>
    %c0_10 = arith.constant 0 : index
    %c0_11 = arith.constant 0 : index
    %c0_12 = arith.constant 0 : index
    %20 = vector.load %arg7[%c0_10, %c0_11, %c0_12] : memref<1x2x128xf32, #tpu.memory_space<vmem>>, vector<1x2x128xf32>
    tpu.vector_store %arg7[%c0_10, %c0_11, %c0_12], %19 {strides = array<i32>} : memref<1x2x128xf32, #tpu.memory_space<vmem>>, vector<1x2x128xf32>,
    %c0_13 = arith.constant 0 : index
    %c0_14 = arith.constant 0 : index
    %21 = vector.load %arg5[%c0_13, %c0_14] : memref<1x128xf32, #tpu.memory_space<vmem>>, vector<1x128xf32>
    %22 = vector.broadcast %21 : vector<1x128xf32> to vector<32x128xf32>
    %23 = arith.addf %12, %22 : vector<32x128xf32>
    %24 = arith.truncf %23 : vector<32x128xf32> to vector<32x128xbf16>
    %c0_15 = arith.constant 0 : index
    %c0_16 = arith.constant 0 : index
    %25 = vector.load %arg6[%c0_15, %c0_16] : memref<32x128xbf16, #tpu.memory_space<vmem>>, vector<32x128xbf16>
    tpu.vector_store %arg6[%c0_15, %c0_16], %24 {strides = array<i32>} : memref<32x128xbf16, #tpu.memory_space<vmem>>, vector<32x128xbf16>,
    return
  }
  func.func @transform_0(%arg0: i32) -> (i32, i32) {
    %c0_i32 = arith.constant 0 : i32
    %c0_i32_0 = arith.constant 0 : i32
    return %arg0, %c0_i32 : i32, i32
  }
  func.func @transform_1(%arg0: i32) -> (i32, i32) {
    %c0_i32 = arith.constant 0 : i32
    %c0_i32_0 = arith.constant 0 : i32
    %c0_i32_1 = arith.constant 0 : i32
    return %c0_i32, %c0_i32_0 : i32, i32
  }
  func.func @transform_2(%arg0: i32) -> (i32, i32) {
    %c0_i32 = arith.constant 0 : i32
    %c0_i32_0 = arith.constant 0 : i32
    %c0_i32_1 = arith.constant 0 : i32
    return %c0_i32, %c0_i32_0 : i32, i32
  }
  func.func @transform_3(%arg0: i32) -> (i32, i32) {
    %c0_i32 = arith.constant 0 : i32
    %c0_i32_0 = arith.constant 0 : i32
    %c0_i32_1 = arith.constant 0 : i32
    return %c0_i32, %c0_i32_0 : i32, i32
  }
  func.func @transform_4(%arg0: i32) -> (i32, i32) {
    %c0_i32 = arith.constant 0 : i32
    %c0_i32_0 = arith.constant 0 : i32
    %c0_i32_1 = arith.constant 0 : i32
    return %c0_i32, %c0_i32_0 : i32, i32
  }
  func.func @transform_5(%arg0: i32) -> (i32, i32) {
    %c0_i32 = arith.constant 0 : i32
    %c0_i32_0 = arith.constant 0 : i32
    return %arg0, %c0_i32 : i32, i32
  }
  func.func @transform_6(%arg0: i32) -> (i32, i32, i32) {
    %c0_i32 = arith.constant 0 : i32
    %c0_i32_0 = arith.constant 0 : i32
    %c0_i32_1 = arith.constant 0 : i32
    return %arg0, %c0_i32, %c0_i32_0 : i32, i32, i32
  }
}

module attributes {stable_mosaic.version = 11 : i64} {
  func.func @kernel(%arg0: i32, %arg1: memref<128x144xbf16, #tpu.memory_space<vmem>>, %arg2: memref<144x128xbf16, #tpu.memory_space<vmem>>, %arg3: memref<1x144xf32, #tpu.memory_space<vmem>>, %arg4: memref<1x144xf32, #tpu.memory_space<vmem>>, %arg5: memref<1x128xf32, #tpu.memory_space<vmem>>, %arg6: memref<128x128xf32, #tpu.memory_space<vmem>>) attributes {dimension_semantics = [#tpu.dimension_semantics<parallel>], iteration_bounds = array<i64: 1>, scalar_prefetch = 0 : i64, scratch_operands = 0 : i64, tpu.core_type = #tpu.core_type<tc>, window_params = [{transform_indices = @transform_0, window_bounds = array<i64: 128, 144>}, {pipeline_mode = #tpu.pipeline_mode<synchronous>, transform_indices = @transform_1, window_bounds = array<i64: 144, 128>}, {pipeline_mode = #tpu.pipeline_mode<synchronous>, transform_indices = @transform_2, window_bounds = array<i64: 1, 144>}, {pipeline_mode = #tpu.pipeline_mode<synchronous>, transform_indices = @transform_3, window_bounds = array<i64: 1, 144>}, {pipeline_mode = #tpu.pipeline_mode<synchronous>, transform_indices = @transform_4, window_bounds = array<i64: 1, 128>}, {transform_indices = @transform_5, window_bounds = array<i64: 128, 128>}]} {
    %c0 = arith.constant 0 : index
    %c0_0 = arith.constant 0 : index
    %0 = vector.load %arg1[%c0, %c0_0] : memref<128x144xbf16, #tpu.memory_space<vmem>>, vector<128x144xbf16>
    %c0_1 = arith.constant 0 : index
    %c0_2 = arith.constant 0 : index
    %1 = vector.load %arg3[%c0_1, %c0_2] : memref<1x144xf32, #tpu.memory_space<vmem>>, vector<1x144xf32>
    %2 = arith.extf %0 : vector<128x144xbf16> to vector<128x144xf32>
    %3 = vector.broadcast %1 : vector<1x144xf32> to vector<128x144xf32>
    %4 = arith.mulf %2, %3 : vector<128x144xf32>
    %c0_3 = arith.constant 0 : index
    %c0_4 = arith.constant 0 : index
    %5 = vector.load %arg4[%c0_3, %c0_4] : memref<1x144xf32, #tpu.memory_space<vmem>>, vector<1x144xf32>
    %6 = vector.broadcast %5 : vector<1x144xf32> to vector<128x144xf32>
    %7 = arith.addf %4, %6 : vector<128x144xf32>
    %cst = arith.constant 0.000000e+00 : f32
    %8 = vector.broadcast %cst : f32 to vector<128x144xf32>
    %9 = arith.maximumf %7, %8 : vector<128x144xf32>
    %10 = arith.truncf %9 : vector<128x144xf32> to vector<128x144xbf16>
    %c0_5 = arith.constant 0 : index
    %c0_6 = arith.constant 0 : index
    %11 = vector.load %arg2[%c0_5, %c0_6] : memref<144x128xbf16, #tpu.memory_space<vmem>>, vector<144x128xbf16>
    %cst_7 = arith.constant dense<0.000000e+00> : vector<128x128xf32>
    %12 = tpu.matmul %10, %11, %cst_7 {dimension_numbers = #tpu.dot_dimension_numbers<[1], [0], [0], [1], [0, 0, 1, 1], [], []>} : vector<128x144xbf16>, vector<144x128xbf16>, vector<128x128xf32> -> vector<128x128xf32>
    %c0_8 = arith.constant 0 : index
    %c0_9 = arith.constant 0 : index
    %13 = vector.load %arg5[%c0_8, %c0_9] : memref<1x128xf32, #tpu.memory_space<vmem>>, vector<1x128xf32>
    %14 = vector.broadcast %13 : vector<1x128xf32> to vector<128x128xf32>
    %15 = arith.addf %12, %14 : vector<128x128xf32>
    %16 = math.tanh %15 : vector<128x128xf32>
    %c0_10 = arith.constant 0 : index
    %c0_11 = arith.constant 0 : index
    %17 = vector.load %arg6[%c0_10, %c0_11] : memref<128x128xf32, #tpu.memory_space<vmem>>, vector<128x128xf32>
    tpu.vector_store %arg6[%c0_10, %c0_11], %16 {strides = array<i32>} : memref<128x128xf32, #tpu.memory_space<vmem>>, vector<128x128xf32>,
    return
  }
  func.func @transform_0(%arg0: i32) -> (i32, i32) {
    %c0_i32 = arith.constant 0 : i32
    %c0_i32_0 = arith.constant 0 : i32
    return %arg0, %c0_i32 : i32, i32
  }
  func.func @transform_1(%arg0: i32) -> (i32, i32) {
    %c0_i32 = arith.constant 0 : i32
    %c0_i32_0 = arith.constant 0 : i32
    %c0_i32_1 = arith.constant 0 : i32
    return %c0_i32, %c0_i32_0 : i32, i32
  }
  func.func @transform_2(%arg0: i32) -> (i32, i32) {
    %c0_i32 = arith.constant 0 : i32
    %c0_i32_0 = arith.constant 0 : i32
    %c0_i32_1 = arith.constant 0 : i32
    return %c0_i32, %c0_i32_0 : i32, i32
  }
  func.func @transform_3(%arg0: i32) -> (i32, i32) {
    %c0_i32 = arith.constant 0 : i32
    %c0_i32_0 = arith.constant 0 : i32
    %c0_i32_1 = arith.constant 0 : i32
    return %c0_i32, %c0_i32_0 : i32, i32
  }
  func.func @transform_4(%arg0: i32) -> (i32, i32) {
    %c0_i32 = arith.constant 0 : i32
    %c0_i32_0 = arith.constant 0 : i32
    %c0_i32_1 = arith.constant 0 : i32
    return %c0_i32, %c0_i32_0 : i32, i32
  }
  func.func @transform_5(%arg0: i32) -> (i32, i32) {
    %c0_i32 = arith.constant 0 : i32
    %c0_i32_0 = arith.constant 0 : i32
    return %arg0, %c0_i32 : i32, i32
  }
}

</mosaic_0001>

<bundles_post_ra>
// kernel: tile.46
= control target key start
LH: loop header
LB: loop body
LE: loop exit
PB: predicated region body
PF: predicated region fallthrough
CT: control target
= control target key end

     0   :  { %s20_s0 = inlined_call_operand.<no memory space> [shape: f32[], index: 0, kind: input, shape index: {}]   ;;  %s21_s1 = inlined_call_operand.vmem [shape: f32[1,64], index: 1, kind: output, shape index: {}]  }
   0x1   :  { %v2_v0 = vstv %s20_s0 }
   0x2   :  { %3 = vst [vmem:[%s21_s1] sm:$0x1] %v2_v0 }

// kernel: unet_forward.6
= control target key start
LH: loop header
LB: loop body
LE: loop exit
PB: predicated region body
PF: predicated region fallthrough
CT: control target
= control target key end

     0   :  { %vm146_vm0 = vcmask 523264   ;;  %s676_s1 = inlined_call_operand.vmem [shape: bf16[64,128], index: 1, kind: input, shape index: {}]   ;;  %s677_s0 = inlined_call_operand.vmem [shape: bf16[128,64], index: 0, kind: input, shape index: {}]   ;;  %s678_s2 = inlined_call_operand.vmem [shape: f32[1,64], index: 2, kind: input, shape index: {}]   ;;  %s679_s3 = inlined_call_operand.vmem [shape: f32[1,64], index: 3, kind: input, shape index: {}]   ;;  %s680_s4 = inlined_call_operand.vmem [shape: f32[1,128], index: 4, kind: input, shape index: {}]   ;;  %s681_s5 = inlined_call_operand.vmem [shape: bf16[128,128], index: 5, kind: output, shape index: {}]  }
   0x1   :  { %v529_v0 = vld [vmem:[%s676_s1 + $0x18] sm:$0xff]   ;;  %v530_v1 = vld [vmem:[%s676_s1 + $0x10] sm:$0xff]   ;;  %v531_v2 = vld [vmem:[%s676_s1 + $0x8] sm:$0xff]  }
   0x2   :  { %497 = vmatprep.subr.bf16.mxu0 %v529_v0  ;;  %521 = vmatprep.subr.bf16.mxu1 %v529_v0  ;;  %v400_v3 = vld [vmem:[%s677_s0] sm:$0xff]   ;;  %v471_v8 = vld [vmem:[%s677_s0 + $0x8] sm:$0xff]   ;;  %v472_v15 = vld [vmem:[%s677_s0 + $0x10] sm:$0xff]  }
   0x3   :  { %498 = vmatpush3.bf16.msra.mxu0 %v529_v0  ;;  %525 = vmatpush3.bf16.msra.mxu1 %v529_v0  ;;  %v578_v4 = vld [vmem:[%s678_s2] ss:$0 sm:$0xff]  ;;  %v401_v5 = vunpack.c.l.bf16 %v400_v3  ;;  %v402_v6 = vunpack.c.h.bf16 %v400_v3  ;;  %v475_v9 = vld [vmem:[%s677_s0 + $0x28] sm:$0xff]   ;;  %v405_v13 = vunpack.c.l.bf16 %v471_v8  ;;  %v406_v14 = vunpack.c.h.bf16 %v471_v8  ;;  %v476_v29 = vld [vmem:[%s677_s0 + $0x30] sm:$0xff]  }
   0x4   :  { %499 = vmatprep.subr.bf16.mxu0 %v530_v1  ;;  %522 = vmatprep.subr.bf16.mxu1 %v530_v1  ;;  %v474_v7 = vld [vmem:[%s677_s0 + $0x20] sm:$0xff]   ;;  %v421_v18 = vunpack.c.l.bf16 %v475_v9  ;;  %v422_v19 = vunpack.c.h.bf16 %v475_v9  ;;  %v409_v24 = vunpack.c.l.bf16 %v472_v15  ;;  %v473_v34 = vld [vmem:[%s677_s0 + $0x18] sm:$0xff]   ;;  %v410_v38 = vunpack.c.h.bf16 %v472_v15 }
   0x5   :  { %v592_v10 = vld [vmem:[%s679_s3] ss:$0 sm:$0xff]  ;;  %v417_v11 = vunpack.c.l.bf16 %v474_v7  ;;  %v418_v12 = vunpack.c.h.bf16 %v474_v7  ;;  %v60_v16 = vmul.f32 %v401_v5, %v578_v4  ;;  %v61_v17 = vmul.f32 %v402_v6, %v578_v4  ;;  %v477_v43 = vld [vmem:[%s677_s0 + $0x38] sm:$0xff]  }
   0x6   :  { %v532_v20 = vld [vmem:[%s676_s1] sm:$0xff]   ;;  %v62_v23 = vmul.f32 %v405_v13, %v578_v4  ;;  %v63_v27 = vmul.f32 %v406_v14, %v578_v4  ;;  %v70_v28 = vmul.f32 %v421_v18, %v578_v4  ;;  %v71_v33 = vmul.f32 %v422_v19, %v578_v4 }
   0x7   :  { %500 = vmatpush3.bf16.msra.mxu0 %v530_v1  ;;  %526 = vmatpush3.bf16.msra.mxu1 %v530_v1  ;;  %v68_v21 = vmul.f32 %v417_v11, %v578_v4  ;;  %v69_v22 = vmul.f32 %v418_v12, %v578_v4  ;;  %v83_v25 = vadd.f32 %v592_v10, %v60_v16  ;;  %v425_v42 = vunpack.c.l.bf16 %v476_v29 }
   0x8   :  { %501 = vmatprep.subr.bf16.mxu0 %v531_v2  ;;  %523 = vmatprep.subr.bf16.mxu1 %v531_v2  ;;  %v84_v26 = vadd.f32 %v592_v10, %v61_v17  ;;  %v85_v32 = vadd.f32 %v592_v10, %v62_v23  ;;  %v86_v36 = vadd.f32 %v592_v10, %v63_v27  ;;  %v426_v46 = vunpack.c.h.bf16 %v476_v29 }
   0x9   :  { %v91_v30 = vadd.f32 %v592_v10, %v68_v21  ;;  %v92_v31 = vadd.f32 %v592_v10, %v69_v22  ;;  %v93_v37 = vadd.f32 %v592_v10, %v70_v28  ;;  %v94_v40 = vadd.f32 %v592_v10, %v71_v33 }
   0xa   :  { %v99_v35 = vpack.c.bf16 %v84_v26, %v83_v25  ;;  %v64_v41 = vmul.f32 %v409_v24, %v578_v4  ;;  %v100_v44 = vpack.c.bf16 %v86_v36, %v85_v32  ;;  %v65_v45 = vmul.f32 %v410_v38, %v578_v4 }
   0xb   :  { %502 = vmatpush3.bf16.msra.mxu0 %v531_v2  ;;  %527 = vmatpush3.bf16.msra.mxu1 %v531_v2  ;;  %v103_v39 = vpack.c.bf16 %v92_v31, %v91_v30  ;;  %v413_v47 = vunpack.c.l.bf16 %v473_v34  ;;  %v104_v48 = vpack.c.bf16 %v94_v40, %v93_v37  ;;  %v72_v50 = vmul.f32 %v425_v42, %v578_v4 }
   0xc   :  { %503 = vmatprep.subr.bf16.mxu0 %v532_v20  ;;  %524 = vmatprep.subr.bf16.mxu1 %v532_v20  ;;  %v87_v49 = vadd.f32 %v592_v10, %v64_v41  ;;  %v414_v51 = vunpack.c.h.bf16 %v473_v34  ;;  %v88_v52 = vadd.f32 %v592_v10, %v65_v45  ;;  %v73_v53 = vmul.f32 %v426_v46, %v578_v4 }
   0xd   :  { %505 = vmatprep.mubr.msk.bf16.mxu0 %vm146_vm0, %v99_v35  ;;  %513 = vmatprep.mubr.msk.bf16.mxu1 %vm146_vm0, %v103_v39  ;;  %v66_v54 = vmul.f32 %v413_v47, %v578_v4  ;;  %v429_v55 = vunpack.c.l.bf16 %v477_v43  ;;  %v95_v56 = vadd.f32 %v592_v10, %v72_v50  ;;  %v430_v58 = vunpack.c.h.bf16 %v477_v43 }
   0xe   :  { %v67_v57 = vmul.f32 %v414_v51, %v578_v4  ;;  %v101_v59 = vpack.c.bf16 %v88_v52, %v87_v49  ;;  %v96_v60 = vadd.f32 %v592_v10, %v73_v53 }
   0xf   :  { %504 = vmatpush3.bf16.msra.mxu0 %v532_v20  ;;  %528 = vmatpush3.bf16.msra.mxu1 %v532_v20  ;;  %v74_v61 = vmul.f32 %v429_v55, %v578_v4  ;;  %v89_v62 = vadd.f32 %v592_v10, %v66_v54  ;;  %v75_v0 = vmul.f32 %v430_v58, %v578_v4  ;;  %v354_v4 = vld [vmem:[%s680_s4] ss:$0 sm:$0xff] }
  0x10   :  { %v90_v63 = vadd.f32 %v592_v10, %v67_v57  ;;  %v105_v1 = vpack.c.bf16 %v96_v60, %v95_v56 }
  0x11   :  { %v97_v2 = vadd.f32 %v592_v10, %v74_v61  ;;  %v98_v3 = vadd.f32 %v592_v10, %v75_v0 }
  0x12   :  { %506 = vmatmul.mubr.msk.bf16.vlgmr.msra.gmra.mxu0 %vm146_vm0, %v100_v44  ;;  %514 = vmatmul.mubr.msk.bf16.vlgmr.msra.gmra.mxu1 %vm146_vm0, %v104_v48  ;;  %v102_v5 = vpack.c.bf16 %v90_v63, %v89_v62 }
  0x13   :  { %509 = vmatprep.mubr.msk.bf16.mxu0 %vm146_vm0, %v101_v59  ;;  %517 = vmatprep.mubr.msk.bf16.mxu1 %vm146_vm0, %v105_v1  ;;  %v106_v6 = vpack.c.bf16 %v98_v3, %v97_v2 }
  0x1a   :  { %510 = vmatmul.mubr.msk.bf16.gmra.mxu0 %vm146_vm0, %v102_v5  ;;  %518 = vmatmul.mubr.msk.bf16.gmra.mxu1 %vm146_vm0, %v106_v6 }
  0xd2   :  { %v507_v7 = vpop.f32.mrf.mxu0  ;;  %v515_v8 = vpop.f32.mrf.mxu1 }
  0xd3   :  { %v214_v14 = vadd.f32 %v507_v7, %v354_v4  ;;  %v246_v10 = vadd.f32 %v515_v8, %v354_v4 }
  0xd4   :  { %v205_v9 = vpop.f32.mrf.mxu0  ;;  %v237_v11 = vpop.f32.mrf.mxu1 }
  0xd5   :  { %v206_v17 = vadd.f32 %v354_v4, %v205_v9  ;;  %v238_v18 = vadd.f32 %v354_v4, %v237_v11 }
  0xd6   :  { %v508_v12 = vpop.f32.mrf.mxu0  ;;  %v516_v13 = vpop.f32.mrf.mxu1 }
  0xd7   :  { %v217_v15 = vadd.f32 %v508_v12, %v354_v4  ;;  %v249_v16 = vadd.f32 %v516_v13, %v354_v4 }
  0xd8   :  { %v208_v19 = vpop.f32.mrf.mxu0  ;;  %v240_v20 = vpop.f32.mrf.mxu1 }
  0xd9   :  { %v439_v21 = vpack.c.bf16 %v217_v15, %v214_v14  ;;  %v459_v22 = vpack.c.bf16 %v249_v16, %v246_v10  ;;  %v209_v23 = vadd.f32 %v354_v4, %v208_v19  ;;  %v241_v24 = vadd.f32 %v354_v4, %v240_v20 }
  0xda   :  { %v511_v25 = vpop.f32.mrf.mxu0  ;;  %v519_v26 = vpop.f32.mrf.mxu1 }
  0xdb   :  { %478 = vst [vmem:[%s681_s5 + $0x8] sm:$0xff] %v439_v21   ;;  %482 = vst [vmem:[%s681_s5 + $0x28] sm:$0xff] %v459_v22   ;;  %v434_v27 = vpack.c.bf16 %v209_v23, %v206_v17  ;;  %v454_v28 = vpack.c.bf16 %v241_v24, %v238_v18  ;;  %v230_v33 = vadd.f32 %v511_v25, %v354_v4 }
  0xdc   :  { %v221_v29 = vpop.f32.mrf.mxu0  ;;  %v253_v30 = vpop.f32.mrf.mxu1  ;;  %v262_v34 = vadd.f32 %v519_v26, %v354_v4 }
  0xdd   :  { %435 = vst [vmem:[%s681_s5] sm:$0xff] %v434_v27   ;;  %481 = vst [vmem:[%s681_s5 + $0x20] sm:$0xff] %v454_v28   ;;  %v222_v37 = vadd.f32 %v354_v4, %v221_v29  ;;  %v254_v38 = vadd.f32 %v354_v4, %v253_v30 }
  0xde   :  { %v512_v31 = vpop.f32.mrf.mxu0  ;;  %v520_v32 = vpop.f32.mrf.mxu1 }
  0xdf   :  { %v233_v35 = vadd.f32 %v512_v31, %v354_v4  ;;  %v265_v36 = vadd.f32 %v520_v32, %v354_v4 }
  0xe0   :  { %v224_v39 = vpop.f32.mrf.mxu0  ;;  %v256_v40 = vpop.f32.mrf.mxu1 }
  0xe1   :  { %v449_v41 = vpack.c.bf16 %v233_v35, %v230_v33  ;;  %v469_v42 = vpack.c.bf16 %v265_v36, %v262_v34  ;;  %v225_v43 = vadd.f32 %v354_v4, %v224_v39  ;;  %v257_v44 = vadd.f32 %v354_v4, %v256_v40 }
  0xe3   :  { %480 = vst [vmem:[%s681_s5 + $0x18] sm:$0xff] %v449_v41   ;;  %484 = vst [vmem:[%s681_s5 + $0x38] sm:$0xff] %v469_v42   ;;  %v444_v45 = vpack.c.bf16 %v225_v43, %v222_v37  ;;  %v464_v46 = vpack.c.bf16 %v257_v44, %v254_v38 }
  0xe5   :  { %479 = vst [vmem:[%s681_s5 + $0x10] sm:$0xff] %v444_v45   ;;  %483 = vst [vmem:[%s681_s5 + $0x30] sm:$0xff] %v464_v46  }

// kernel: tile.44
= control target key start
LH: loop header
LB: loop body
LE: loop exit
PB: predicated region body
PF: predicated region fallthrough
CT: control target
= control target key end

     0   :  { %s20_s0 = inlined_call_operand.<no memory space> [shape: f32[], index: 0, kind: input, shape index: {}]   ;;  %s21_s1 = inlined_call_operand.vmem [shape: f32[1,128], index: 1, kind: output, shape index: {}]  }
   0x1   :  { %v2_v0 = vstv %s20_s0 }
   0x2   :  { %3 = vst [vmem:[%s21_s1] sm:$0x1] %v2_v0 }

// kernel: unet_forward.7
= control target key start
LH: loop header
LB: loop body
LE: loop exit
PB: predicated region body
PF: predicated region fallthrough
CT: control target
= control target key end

     0   :  { %vm202_vm4 = vcmask 1040384   ;;  %s404_s1 = inlined_call_operand.vmem [shape: bf16[128,128], index: 1, kind: input, shape index: {}]   ;;  %s405_s0 = inlined_call_operand.vmem [shape: bf16[32,128], index: 0, kind: input, shape index: {}]   ;;  %s406_s2 = inlined_call_operand.vmem [shape: f32[1,128], index: 2, kind: input, shape index: {}]   ;;  %s407_s3 = inlined_call_operand.vmem [shape: f32[1,128], index: 3, kind: input, shape index: {}]   ;;  %s408_s4 = inlined_call_operand.vmem [shape: f32[1,128], index: 4, kind: input, shape index: {}]   ;;  %s409_s5 = inlined_call_operand.vmem [shape: bf16[32,128], index: 5, kind: output, shape index: {0}]   ;;  %s410_s6 = inlined_call_operand.vmem [shape: f32[1,2,128], index: 6, kind: output, shape index: {1}]  }
   0x1   :  { %v313_v0 = vld [vmem:[%s404_s1 + $0x38] sm:$0xff]   ;;  %v314_v1 = vld [vmem:[%s404_s1 + $0x30] sm:$0xff]   ;;  %v315_v2 = vld [vmem:[%s404_s1 + $0x28] sm:$0xff]  }
   0x2   :  { %293 = vmatprep.subr.bf16.mxu0 %v313_v0  ;;  %v316_v3 = vld [vmem:[%s404_s1 + $0x20] sm:$0xff]   ;;  %v281_v5 = vld [vmem:[%s405_s0 + $0x8] sm:$0xff]   ;;  %v317_v14 = vld [vmem:[%s404_s1 + $0x18] sm:$0xff]  }
   0x3   :  { %294 = vmatpush3.bf16.msra.mxu0 %v313_v0  ;;  %v264_v4 = vld [vmem:[%s405_s0] sm:$0xff]   ;;  %v269_v10 = vunpack.c.l.bf16 %v281_v5  ;;  %v270_v11 = vunpack.c.h.bf16 %v281_v5  ;;  %v318_v21 = vld [vmem:[%s404_s1 + $0x10] sm:$0xff]   ;;  %v319_v27 = vld [vmem:[%s404_s1 + $0x8] sm:$0xff]  }
   0x4   :  { %295 = vmatprep.subr.bf16.mxu0 %v314_v1  ;;  %v244_v6 = vld [vmem:[%s406_s2] ss:$0 sm:$0xff]  ;;  %v265_v7 = vunpack.c.l.bf16 %v264_v4  ;;  %v266_v8 = vunpack.c.h.bf16 %v264_v4 }
   0x5   :  { %v245_v9 = vld [vmem:[%s407_s3] ss:$0 sm:$0xff]  ;;  %v40_v17 = vmul.f32 %v269_v10, %v244_v6  ;;  %v41_v18 = vmul.f32 %v270_v11, %v244_v6 }
   0x6   :  { %v38_v12 = vmul.f32 %v265_v7, %v244_v6  ;;  %v39_v13 = vmul.f32 %v266_v8, %v244_v6  ;;  %v320_v30 = vld [vmem:[%s404_s1] sm:$0xff]  }
   0x7   :  { %296 = vmatpush3.bf16.msra.mxu0 %v314_v1  ;;  %v51_v25 = vadd.f32 %v245_v9, %v40_v17  ;;  %v52_v26 = vadd.f32 %v245_v9, %v41_v18  ;;  %v254_v35 = vld [vmem:[%s408_s4] ss:$0 sm:$0xff] }
   0x8   :  { %297 = vmatprep.subr.bf16.mxu0 %v315_v2  ;;  %v49_v15 = vadd.f32 %v245_v9, %v38_v12  ;;  %v50_v16 = vadd.f32 %v245_v9, %v39_v13 }
   0x9   :  { %v59_v28 = vmul.f32 0.2, %v51_v25  ;;  %v60_v29 = vmul.f32 0.2, %v52_v26  ;;  %vm55_vm2 = vcmp.gt.f32.partialorder %v51_v25, 0.0  ;;  %vm56_vm3 = vcmp.gt.f32.partialorder %v52_v26, 0.0 }
   0xa   :  { %vm53_vm0 = vcmp.gt.f32.partialorder %v49_v15, 0.0  ;;  %vm54_vm1 = vcmp.gt.f32.partialorder %v50_v16, 0.0  ;;  %v57_v19 = vmul.f32 0.2, %v49_v15  ;;  %v58_v20 = vmul.f32 0.2, %v50_v16 }
   0xb   :  { %298 = vmatpush3.bf16.msra.mxu0 %v315_v2  ;;  %v63_v31 = vsel %vm55_vm2, %v51_v25, %v59_v28  ;;  %v64_v32 = vsel %vm56_vm3, %v52_v26, %v60_v29 }
   0xc   :  { %299 = vmatprep.subr.bf16.mxu0 %v316_v3  ;;  %v61_v22 = vsel %vm53_vm0, %v49_v15, %v57_v19  ;;  %v62_v23 = vsel %vm54_vm1, %v50_v16, %v58_v20  ;;  %v66_v33 = vpack.c.bf16 %v64_v32, %v63_v31 }
   0xd   :  { %v65_v24 = vpack.c.bf16 %v62_v23, %v61_v22 }
   0xf   :  { %300 = vmatpush3.bf16.msra.mxu0 %v316_v3  ;;  %309 = vmatprep.mubr.bf16.mxu0 %v65_v24 }
  0x10   :  { %301 = vmatprep.subr.bf16.mxu0 %v317_v14 }
  0x13   :  { %302 = vmatpush3.bf16.msra.mxu0 %v317_v14 }
  0x14   :  { %303 = vmatprep.subr.bf16.mxu0 %v318_v21 }
  0x17   :  { %304 = vmatpush3.bf16.msra.mxu0 %v318_v21 }
  0x18   :  { %305 = vmatprep.subr.bf16.mxu0 %v319_v27 }
  0x1b   :  { %306 = vmatpush3.bf16.msra.mxu0 %v319_v27 }
  0x1c   :  { %307 = vmatprep.subr.bf16.mxu0 %v320_v30 }
  0x1f   :  { %308 = vmatpush3.bf16.msra.mxu0 %v320_v30 }
  0x22   :  { %310 = vmatmul.mubr.bf16.vlgmr.msra.gmra.mxu0 %v66_v33 }
  0xe2   :  { %v311_v34 = vpop.f32.mrf.mxu0 }
  0xe3   :  { %v214_v38 = vadd.f32 %v311_v34, %v254_v35  ;;  %v191_v47 = vmul.f32 %v311_v34, %v311_v34 }
  0xe4   :  { %v165_v36 = vpop.f32.mrf.mxu0 }
  0xe5   :  { %v189_v40 = vmul.f32 %v165_v36, %v165_v36  ;;  %v212_v41 = vadd.f32 %v254_v35, %v165_v36 }
  0xe6   :  { %v312_v37 = vpop.f32.mrf.mxu0 }
  0xe7   :  { %v215_v39 = vadd.f32 %v312_v37, %v254_v35  ;;  %v192_v51 = vmul.f32 %v312_v37, %v312_v37 }
  0xe8   :  { %v168_v42 = vpop.f32.mrf.mxu0 }
  0xe9   :  { %v279_v43 = vpack.c.bf16 %v215_v39, %v214_v38  ;;  %v180_v44 = vadd.f32 %v168_v42, %v165_v36  ;;  %v190_v45 = vmul.f32 %v168_v42, %v168_v42  ;;  %v213_v46 = vadd.f32 %v254_v35, %v168_v42 }
  0xeb   :  { %v181_v48 = vadd.f32 %v311_v34, %v180_v44  ;;  %v193_v49 = vadd.f32 %v190_v45, %v189_v40  ;;  %v274_v50 = vpack.c.bf16 %v213_v46, %v212_v41  ;;  %282 = vst [vmem:[%s409_s5 + $0x8] sm:$0xff] %v279_v43  }
  0xed   :  { %v182_v52 = vadd.f32 %v312_v37, %v181_v48  ;;  %v194_v53 = vadd.f32 %v193_v49, %v191_v47  ;;  %275 = vst [vmem:[%s409_s5] sm:$0xff] %v274_v50  }
  0xef   :  { %v183_v54 = vrot.slane %v182_v52, 4  ;;  %v195_v55 = vadd.f32 %v194_v53, %v192_v51 }
  0xf1   :  { %v184_v56 = vadd.f32 %v183_v54, %v182_v52  ;;  %v196_v57 = vrot.slane %v195_v55, 4 }
  0xf3   :  { %v185_v58 = vrot.slane %v184_v56, 2  ;;  %v197_v59 = vadd.f32 %v196_v57, %v195_v55 }
  0xf5   :  { %v186_v60 = vadd.f32 %v185_v58, %v184_v56  ;;  %v198_v61 = vrot.slane %v197_v59, 2 }
  0xf7   :  { %v187_v62 = vrot.slane %v186_v60, 1  ;;  %v199_v63 = vadd.f32 %v198_v61, %v197_v59 }
  0xf9   :  { %v200_v0 = vrot.slane %v199_v63, 1  ;;  %v188_v1 = vadd.f32 %v187_v62, %v186_v60 }
  0xfb   :  { %v201_v2 = vadd.f32 %v200_v0, %v199_v63 }
  0xfd   :  { %v203_v3 = vsel %vm202_vm4, %v188_v1, %v201_v2 }
  0xfe   :  { %204 = vst [vmem:[%s410_s6] sm:$0x3] %v203_v3 }

// kernel: tile.50
= control target key start
LH: loop header
LB: loop body
LE: loop exit
PB: predicated region body
PF: predicated region fallthrough
CT: control target
= control target key end

     0   :  { %s28_s0 = inlined_call_operand.vmem [shape: f32[16], index: 0, kind: input, shape index: {}]   ;;  %s29_s1 = inlined_call_operand.vmem [shape: f32[16,16], index: 1, kind: output, shape index: {}]  }
   0x1   :  { %v4_v0 = vld [vmem:[%s28_s0] ss:$0 sm:$0xff] }
   0x2   :  { %5 = vst [vmem:[%s29_s1] sm:$0xff] %v4_v0  ;;  %8 = vst [vmem:[%s29_s1 + $0x8] sm:$0xff] %v4_v0 }

// kernel: tile.55
= control target key start
LH: loop header
LB: loop body
LE: loop exit
PB: predicated region body
PF: predicated region fallthrough
CT: control target
= control target key end

     0   :  { %s7_s6 = smov 3  ;;  %s21_s9 = smov 3  ;;  %vm4_vm0 = vcmask 130048   ;;  %vm11_vm1 = vcmask 1048448   ;;  %vm18_vm2 = vcmask 917248   ;;  %vm25_vm3 = vcmask 786048   ;;  %s131_s0 = inlined_call_operand.vmem [shape: f32[16,16], index: 0, kind: input, shape index: {}]   ;;  %s132_s1 = inlined_call_operand.vmem [shape: f32[1,256], index: 1, kind: output, shape index: {}]  }
   0x1   :  { %v69_v0 = vld [vmem:[%s131_s0 + $0x7] ss:$8 sm:%s7_s6]   ;;  %s84_s10 = smov 112   ;;  %v71_v1 = vld [vmem:[%s131_s0 + $0x5] ss:$8 sm:%s21_s9]   ;;  %s14_s13 = smov 3 }
   0x2   :  { %9 = vrot.lane.b32.xlu0 %v69_v0, %s84_s10  ;;  %s85_s14 = smov 80   ;;  %v70_v2 = vld [vmem:[%s131_s0 + $0x6] ss:$8 sm:%s14_s13]   ;;  %s28_s17 = smov 3  ;;  %vm32_vm4 = vcmask 654848   ;;  %vm39_vm5 = vcmask 523648  }
   0x3   :  { %23 = vrot.lane.b32.xlu1 %v71_v1, %s85_s14  ;;  %v72_v3 = vld [vmem:[%s131_s0 + $0x4] ss:$8 sm:%s28_s17]   ;;  %s35_s20 = smov 3  ;;  %s42_s21 = smov 3  ;;  %vm46_vm6 = vcmask 392448   ;;  %vm53_vm7 = vcmask 261248  }
   0x4   :  { %s86_s22 = smov 96   ;;  %s87_s23 = smov 64   ;;  %v73_v4 = vld [vmem:[%s131_s0 + $0x3] ss:$8 sm:%s35_s20]   ;;  %v74_v5 = vld [vmem:[%s131_s0 + $0x2] ss:$8 sm:%s42_s21]  }
   0x5   :  { %s2_s26 = smov 3  ;;  %s49_s29 = smov 3 }
   0x6   :  { %16 = vrot.lane.b32.xlu0 %v70_v2, %s86_s22  ;;  %v3_v6 = vld [vmem:[%s131_s0] ss:$8 sm:%s2_s26]   ;;  %s88_s3 = smov 48   ;;  %s89_s4 = smov 32  }
   0x7   :  { %30 = vrot.lane.b32.xlu1 %v72_v3, %s87_s23  ;;  %5 = vst.msk [vmem:[#allocation0] ss:$8 sm:$0x3] %vm4_vm0, %v3_v6   ;;  %v75_v7 = vld [vmem:[%s131_s0 + $0x1] ss:$8 sm:%s49_s29]   ;;  %s90_s0 = smov 16  }
   0xa   :  { %37 = vrot.lane.b32.xlu0 %v73_v4, %s88_s3 }
   0xb   :  { %44 = vrot.lane.b32.xlu1 %v74_v5, %s89_s4 }
   0xe   :  { %51 = vrot.lane.b32.xlu0 %v75_v7, %s90_s0 }
  0x74   :  { %v10_v8 = vpop.permute.xlu0 %9  }
  0x75   :  { %12 = vst.msk [vmem:[#allocation0] ss:$8 sm:$0x3] %vm11_vm1, %v10_v8   ;;  %v24_v9 = vpop.permute.xlu1 %23  }
  0x78   :  { %v17_v10 = vpop.permute.xlu0 %16  }
  0x79   :  { %19 = vst.msk [vmem:[#allocation0] ss:$8 sm:$0x3] %vm18_vm2, %v17_v10   ;;  %v31_v11 = vpop.permute.xlu1 %30  }
  0x7a   :  { %26 = vst.msk [vmem:[#allocation0] ss:$8 sm:$0x3] %vm25_vm3, %v24_v9  }
  0x7b   :  { %33 = vst.msk [vmem:[#allocation0] ss:$8 sm:$0x3] %vm32_vm4, %v31_v11  }
  0x7c   :  { %v38_v12 = vpop.permute.xlu0 %37  }
  0x7d   :  { %40 = vst.msk [vmem:[#allocation0] ss:$8 sm:$0x3] %vm39_vm5, %v38_v12   ;;  %v45_v13 = vpop.permute.xlu1 %44  }
  0x7e   :  { %47 = vst.msk [vmem:[#allocation0] ss:$8 sm:$0x3] %vm46_vm6, %v45_v13  }
  0x80   :  { %v52_v14 = vpop.permute.xlu0 %51  }
  0x81   :  { %54 = vst.msk [vmem:[#allocation0] ss:$8 sm:$0x3] %vm53_vm7, %v52_v14  }
  0x88   :  { %v59_v15 = vld [vmem:[#allocation0] sm:$0x1]  ;;  %v64_v16 = vld [vmem:[#allocation0 + $0x8] sm:$0x1] }
  0x89   :  { %62 = vst [vmem:[%s132_s1] sm:$0x1] %v59_v15  ;;  %76 = vst [vmem:[%s132_s1 + $0x1] sm:$0x1] %v64_v16 }

// kernel: unet_forward.8
= control target key start
LH: loop header
LB: loop body
LE: loop exit
PB: predicated region body
PF: predicated region fallthrough
CT: control target
= control target key end

     0   :  { %v26_v5 = vlaneseq  ;;  %s389_s1 = inlined_call_operand.vmem [shape: bf16[256,128], index: 1, kind: input, shape index: {}]   ;;  %s390_s0 = inlined_call_operand.vmem [shape: bf16[8,256], index: 0, kind: input, shape index: {}]   ;;  %s391_s2 = inlined_call_operand.vmem [shape: f32[1,256], index: 2, kind: input, shape index: {}]   ;;  %s392_s3 = inlined_call_operand.vmem [shape: f32[1,256], index: 3, kind: input, shape index: {}]   ;;  %s393_s4 = inlined_call_operand.vmem [shape: f32[1,128], index: 4, kind: input, shape index: {}]   ;;  %s394_s5 = inlined_call_operand.vmem [shape: bf16[8,128], index: 5, kind: output, shape index: {}]  }
   0x1   :  { %v280_v0 = vld [vmem:[%s389_s1 + $0x78] sm:$0xff]   ;;  %v282_v2 = vld [vmem:[%s389_s1 + $0x70] sm:$0xff]   ;;  %v284_v4 = vld [vmem:[%s389_s1 + $0x68] sm:$0xff]  }
   0x2   :  { %v281_v1 = vld [vmem:[%s389_s1 + $0x38] sm:$0xff]   ;;  %258 = vmatprep.subr.bf16.mxu0 %v280_v0  ;;  %v283_v3 = vld [vmem:[%s389_s1 + $0x30] sm:$0xff]   ;;  %v285_v6 = vld [vmem:[%s389_s1 + $0x28] sm:$0xff]   ;;  %v27_v8 = vshrl.u32 %v26_v5, 7 }
   0x3   :  { %259 = vmatpush3.bf16.msra.mxu0 %v281_v1  ;;  %v286_v7 = vld [vmem:[%s389_s1 + $0x60] sm:$0xff]   ;;  %v288_v10 = vld [vmem:[%s389_s1 + $0x58] sm:$0xff]   ;;  %v290_v14 = vld [vmem:[%s389_s1 + $0x50] sm:$0xff]  }
   0x4   :  { %260 = vmatprep.subr.bf16.mxu0 %v282_v2  ;;  %v287_v9 = vld [vmem:[%s389_s1 + $0x20] sm:$0xff]   ;;  %v28_v11 = vsub.s32 0, %v27_v8  ;;  %v32_v12 = vsub.s32 1, %v27_v8  ;;  %v289_v13 = vld [vmem:[%s389_s1 + $0x18] sm:$0xff]   ;;  %v291_v24 = vld [vmem:[%s389_s1 + $0x10] sm:$0xff]  }
   0x5   :  { %v21_v15 = vld [vmem:[%s390_s0] sm:$0xff]  ;;  %v292_v27 = vld [vmem:[%s389_s1 + $0x48] sm:$0xff]  }
   0x6   :  { %v22_v16 = vld [vmem:[%s391_s2] sm:$0x3]  ;;  %v23_v18 = vunpack.c.l.bf16 %v21_v15  ;;  %v24_v19 = vunpack.c.h.bf16 %v21_v15  ;;  %v293_v30 = vld [vmem:[%s389_s1 + $0x8] sm:$0xff]  }
   0x7   :  { %261 = vmatpush3.bf16.msra.mxu0 %v283_v3  ;;  %v38_v17 = vld [vmem:[%s392_s3] sm:$0x3]  ;;  %v29_v20 = vrot.slane %v22_v16, %v28_v11  ;;  %v33_v21 = vrot.slane %v22_v16, %v32_v12 }
   0x8   :  { %262 = vmatprep.subr.bf16.mxu0 %v284_v4  ;;  %v43_v22 = vrot.slane %v38_v17, %v28_v11  ;;  %v47_v23 = vrot.slane %v38_v17, %v32_v12  ;;  %v294_v33 = vld [vmem:[%s389_s1 + $0x40] sm:$0xff]  }
   0x9   :  { %v37_v25 = vmul.f32 %v33_v21, %v24_v19  ;;  %v36_v26 = vmul.f32 %v29_v20, %v23_v18  ;;  %v295_v36 = vld [vmem:[%s389_s1] sm:$0xff]  }
   0xa   :  { %v241_v40 = vld [vmem:[%s393_s4] ss:$0 sm:$0xff] }
   0xb   :  { %263 = vmatpush3.bf16.msra.mxu0 %v285_v6  ;;  %v51_v28 = vadd.f32 %v47_v23, %v37_v25  ;;  %v50_v29 = vadd.f32 %v43_v22, %v36_v26 }
   0xc   :  { %264 = vmatprep.subr.bf16.mxu0 %v286_v7 }
   0xd   :  { %vm53_vm0 = vcmp.gt.f32.partialorder %v51_v28, 0.0  ;;  %v55_v31 = vmul.f32 0.2, %v51_v28  ;;  %v54_v32 = vmul.f32 0.2, %v50_v29  ;;  %vm52_vm1 = vcmp.gt.f32.partialorder %v50_v29, 0.0 }
   0xf   :  { %265 = vmatpush3.bf16.msra.mxu0 %v287_v9  ;;  %v57_v34 = vsel %vm53_vm0, %v51_v28, %v55_v31  ;;  %v56_v37 = vsel %vm52_vm1, %v50_v29, %v54_v32 }
  0x10   :  { %266 = vmatprep.subr.bf16.mxu0 %v288_v10  ;;  %v59_v35 = vpack.c.bf16 %v57_v34, %v57_v34  ;;  %v58_v38 = vpack.c.bf16 %v56_v37, %v56_v37 }
  0x12   :  { %227 = vmatprep.mubr.bf16.mxu0 %v59_v35 }
  0x13   :  { %267 = vmatpush3.bf16.msra.mxu0 %v289_v13 }
  0x14   :  { %268 = vmatprep.subr.bf16.mxu0 %v290_v14 }
  0x17   :  { %269 = vmatpush3.bf16.msra.mxu0 %v291_v24 }
  0x18   :  { %270 = vmatprep.subr.bf16.mxu0 %v292_v27 }
  0x1b   :  { %271 = vmatpush3.bf16.msra.mxu0 %v293_v30 }
  0x1c   :  { %272 = vmatprep.subr.bf16.mxu0 %v294_v33 }
  0x1f   :  { %273 = vmatpush3.bf16.msra.mxu0 %v295_v36 }
  0x22   :  { %228 = vmatmul.mubr.bf16.vlgmr.msra.gmra.mxu0 %v58_v38 }
  0xe2   :  { %v274_v39 = vpop.f32.mrf.mxu0 }
  0xe4   :  { %v275_v41 = vpop.f32.mrf.mxu0 }
  0xe5   :  { %v276_v42 = vadd.f32 %v275_v41, %v274_v39 }
  0xe6   :  { %v277_v43 = vpop.f32.mrf.mxu0 }
  0xe7   :  { %v230_v44 = vadd.f32 %v276_v42, %v241_v40 }
  0xe8   :  { %v278_v45 = vpop.f32.mrf.mxu0 }
  0xe9   :  { %v235_v46 = vpack.c.bf16 %v230_v44, %v230_v44 }
  0xeb   :  { %236 = vst [vmem:[%s394_s5] sm:$0xf] %v235_v46 }

// kernel: tile.42
= control target key start
LH: loop header
LB: loop body
LE: loop exit
PB: predicated region body
PF: predicated region fallthrough
CT: control target
= control target key end

     0   :  { %s32_s0 = inlined_call_operand.<no memory space> [shape: f32[], index: 0, kind: input, shape index: {}]   ;;  %s33_s1 = inlined_call_operand.vmem [shape: f32[1,288], index: 1, kind: output, shape index: {}]  }
   0x1   :  { %v2_v0 = vstv %s32_s0 }
   0x2   :  { %3 = vst [vmem:[%s33_s1] sm:$0x1] %v2_v0  ;;  %8 = vst [vmem:[%s33_s1 + $0x1] sm:$0x1] %v2_v0 }
   0x3   :  { %9 = vst [vmem:[%s33_s1 + $0x2] sm:$0x1] %v2_v0 }

// kernel: unet_forward.9
= control target key start
LH: loop header
LB: loop body
LE: loop exit
PB: predicated region body
PF: predicated region fallthrough
CT: control target
= control target key end

     0   :  { %v409_v1 = vmov 0.0   ;;  %vm410_vm0 = vmmov 0   ;;  %v30_v6 = vlaneseq  ;;  %vm218_vm1 = vcmask 261120   ;;  %s521_s1 = inlined_call_operand.vmem [shape: bf16[288,128], index: 1, kind: input, shape index: {}]   ;;  %s522_s0 = inlined_call_operand.vmem [shape: bf16[8,288], index: 0, kind: input, shape index: {}]   ;;  %s523_s2 = inlined_call_operand.vmem [shape: f32[1,288], index: 2, kind: input, shape index: {}]   ;;  %s524_s3 = inlined_call_operand.vmem [shape: f32[1,288], index: 3, kind: input, shape index: {}]   ;;  %s525_s4 = inlined_call_operand.vmem [shape: f32[1,128], index: 4, kind: input, shape index: {}]   ;;  %s526_s5 = inlined_call_operand.vmem [shape: bf16[8,128], index: 5, kind: output, shape index: {0}]   ;;  %s527_s6 = inlined_call_operand.vmem [shape: f32[1,2,128], index: 6, kind: output, shape index: {1}]  }
   0x1   :  { %v391_v0 = vld [vmem:[%s521_s1 + $0x78] sm:$0xff]   ;;  %381 = vmatprep.subr.bf16.mxu1 %v409_v1  ;;  %385 = vmatprep.mubr.msk.bf16.mxu1 %vm410_vm0, %v409_v1  ;;  %v393_v3 = vld [vmem:[%s521_s1 + $0x70] sm:$0xff]   ;;  %v395_v5 = vld [vmem:[%s521_s1 + $0x68] sm:$0xff]   ;;  %vm315_vm2 = vcmask 1040384  }
   0x2   :  { %v392_v2 = vld [vmem:[%s521_s1 + $0x38] sm:$0xff]   ;;  %356 = vmatprep.subr.bf16.mxu0 %v391_v0  ;;  %v394_v4 = vld [vmem:[%s521_s1 + $0x30] sm:$0xff]   ;;  %v396_v7 = vld [vmem:[%s521_s1 + $0x28] sm:$0xff]   ;;  %v31_v10 = vshrl.u32 %v30_v6, 7 }
   0x3   :  { %357 = vmatpush3.bf16.msra.mxu0 %v392_v2  ;;  %v397_v8 = vld [vmem:[%s521_s1 + $0x60] sm:$0xff]   ;;  %v399_v11 = vld [vmem:[%s521_s1 + $0x58] sm:$0xff]   ;;  %v403_v12 = vld [vmem:[%s521_s1 + $0x88] sm:$0xff]  }
   0x4   :  { %358 = vmatprep.subr.bf16.mxu0 %v393_v3  ;;  %v398_v9 = vld [vmem:[%s521_s1 + $0x20] sm:$0xff]   ;;  %v400_v13 = vld [vmem:[%s521_s1 + $0x18] sm:$0xff]   ;;  %382 = vmatpush3.bf16.msra.mxu1 %v403_v12  ;;  %v40_v14 = vsub.s32 2, %v31_v10  ;;  %v36_v16 = vsub.s32 1, %v31_v10  ;;  %v401_v17 = vld [vmem:[%s521_s1 + $0x50] sm:$0xff]   ;;  %v32_v18 = vsub.s32 0, %v31_v10 }
   0x5   :  { %383 = vmatprep.subr.bf16.mxu1 %v409_v1  ;;  %v406_v15 = vld [vmem:[%s521_s1 + $0x80] sm:$0xff]   ;;  %v24_v19 = vld [vmem:[%s522_s0 + $0x8] sm:$0xf]  ;;  %v402_v22 = vld [vmem:[%s521_s1 + $0x10] sm:$0xff]  }
   0x6   :  { %v25_v20 = vld [vmem:[%s523_s2] sm:$0x7]  ;;  %v28_v23 = vunpack.c.l.bf16 %v24_v19  ;;  %v404_v28 = vld [vmem:[%s521_s1 + $0x48] sm:$0xff]  }
   0x7   :  { %359 = vmatpush3.bf16.msra.mxu0 %v394_v4  ;;  %v48_v21 = vld [vmem:[%s524_s3] sm:$0x7]  ;;  %v41_v24 = vrot.slane %v25_v20, %v40_v14  ;;  %v37_v27 = vrot.slane %v25_v20, %v36_v16  ;;  %v33_v32 = vrot.slane %v25_v20, %v32_v18  ;;  %v405_v37 = vld [vmem:[%s521_s1 + $0x8] sm:$0xff]  }
   0x8   :  { %360 = vmatprep.subr.bf16.mxu0 %v395_v5  ;;  %384 = vmatpush3.bf16.msra.mxu1 %v406_v15  ;;  %v61_v25 = vrot.slane %v48_v21, %v40_v14  ;;  %v23_v26 = vld [vmem:[%s522_s0] sm:$0xff]  ;;  %v57_v31 = vrot.slane %v48_v21, %v36_v16  ;;  %v53_v34 = vrot.slane %v48_v21, %v32_v18 }
   0x9   :  { %v26_v29 = vunpack.c.l.bf16 %v23_v26  ;;  %v27_v30 = vunpack.c.h.bf16 %v23_v26  ;;  %v47_v33 = vmul.f32 %v41_v24, %v28_v23  ;;  %v407_v39 = vld [vmem:[%s521_s1 + $0x40] sm:$0xff]  }
   0xa   :  { %v408_v45 = vld [vmem:[%s521_s1] sm:$0xff]  }
   0xb   :  { %361 = vmatpush3.bf16.msra.mxu0 %v396_v7  ;;  %v46_v35 = vmul.f32 %v37_v27, %v27_v30  ;;  %v45_v36 = vmul.f32 %v33_v32, %v26_v29  ;;  %v67_v38 = vadd.f32 %v61_v25, %v47_v33  ;;  %v355_v56 = vld [vmem:[%s525_s4] ss:$0 sm:$0xff] }
   0xc   :  { %362 = vmatprep.subr.bf16.mxu0 %v397_v8 }
   0xd   :  { %v66_v40 = vadd.f32 %v57_v31, %v46_v35  ;;  %v65_v41 = vadd.f32 %v53_v34, %v45_v36  ;;  %v70_v42 = vmax.f32 %v67_v38, 0.0 }
   0xf   :  { %363 = vmatpush3.bf16.msra.mxu0 %v398_v9  ;;  %v69_v43 = vmax.f32 %v66_v40, 0.0  ;;  %v68_v44 = vmax.f32 %v65_v41, 0.0  ;;  %v73_v46 = vpack.c.bf16 %v70_v42, %v70_v42 }
  0x10   :  { %364 = vmatprep.subr.bf16.mxu0 %v399_v11 }
  0x11   :  { %v72_v47 = vpack.c.bf16 %v69_v43, %v69_v43  ;;  %386 = vmatmul.mubr.msk.bf16.vlgmr.msra.gmra.mxu1 %vm218_vm1, %v73_v46  ;;  %v71_v48 = vpack.c.bf16 %v68_v44, %v68_v44 }
  0x13   :  { %365 = vmatpush3.bf16.msra.mxu0 %v400_v13  ;;  %254 = vmatprep.mubr.bf16.mxu0 %v72_v47 }
  0x14   :  { %366 = vmatprep.subr.bf16.mxu0 %v401_v17 }
  0x17   :  { %367 = vmatpush3.bf16.msra.mxu0 %v402_v22 }
  0x18   :  { %368 = vmatprep.subr.bf16.mxu0 %v404_v28 }
  0x1b   :  { %369 = vmatpush3.bf16.msra.mxu0 %v405_v37 }
  0x1c   :  { %370 = vmatprep.subr.bf16.mxu0 %v407_v39 }
  0x1f   :  { %371 = vmatpush3.bf16.msra.mxu0 %v408_v45 }
  0x22   :  { %255 = vmatmul.mubr.bf16.vlgmr.msra.gmra.mxu0 %v71_v48 }
  0xd1   :  { %v296_v49 = vpop.f32.mrf.mxu1 }
  0xd3   :  { %v387_v50 = vpop.f32.mrf.mxu1 }
  0xd5   :  { %v299_v51 = vpop.f32.mrf.mxu1 }
  0xd7   :  { %v388_v53 = vpop.f32.mrf.mxu1 }
  0xe2   :  { %v372_v52 = vpop.f32.mrf.mxu0 }
  0xe4   :  { %v373_v54 = vpop.f32.mrf.mxu0 }
  0xe5   :  { %v374_v55 = vadd.f32 %v373_v54, %v372_v52 }
  0xe6   :  { %v375_v57 = vpop.f32.mrf.mxu0 }
  0xe7   :  { %v297_v58 = vadd.f32 %v374_v55, %v296_v49 }
  0xe8   :  { %v376_v59 = vpop.f32.mrf.mxu0 }
  0xe9   :  { %v302_v60 = vrot.slane %v297_v58, 4  ;;  %v308_v61 = vmul.f32 %v297_v58, %v297_v58  ;;  %v325_v62 = vadd.f32 %v355_v56, %v297_v58 }
  0xeb   :  { %v303_v63 = vadd.f32 %v302_v60, %v297_v58  ;;  %v309_v0 = vrot.slane %v308_v61, 4  ;;  %v326_v1 = vpack.c.bf16 %v325_v62, %v325_v62 }
  0xed   :  { %v304_v2 = vrot.slane %v303_v63, 2  ;;  %v310_v3 = vadd.f32 %v309_v0, %v308_v61  ;;  %327 = vst [vmem:[%s526_s5] sm:$0xf] %v326_v1 }
  0xef   :  { %v305_v4 = vadd.f32 %v304_v2, %v303_v63  ;;  %v311_v5 = vrot.slane %v310_v3, 2 }
  0xf1   :  { %v306_v6 = vrot.slane %v305_v4, 1  ;;  %v312_v7 = vadd.f32 %v311_v5, %v310_v3 }
  0xf3   :  { %v313_v8 = vrot.slane %v312_v7, 1  ;;  %v307_v9 = vadd.f32 %v306_v6, %v305_v4 }
  0xf5   :  { %v314_v10 = vadd.f32 %v313_v8, %v312_v7 }
  0xf7   :  { %v316_v11 = vsel %vm315_vm2, %v307_v9, %v314_v10 }
  0xf8   :  { %317 = vst [vmem:[%s527_s6] sm:$0x3] %v316_v11 }

// kernel: tile.60
= control target key start
LH: loop header
LB: loop body
LE: loop exit
PB: predicated region body
PF: predicated region fallthrough
CT: control target
= control target key end

     0   :  { %s28_s0 = inlined_call_operand.vmem [shape: f32[32], index: 0, kind: input, shape index: {}]   ;;  %s29_s1 = inlined_call_operand.vmem [shape: f32[9,32], index: 1, kind: output, shape index: {}]  }
   0x1   :  { %v4_v0 = vld [vmem:[%s28_s0] ss:$0 sm:$0xff] }
   0x2   :  { %5 = vst [vmem:[%s29_s1] sm:$0xff] %v4_v0  ;;  %8 = vst [vmem:[%s29_s1 + $0x8] sm:$0xff] %v4_v0 }

// kernel: tile.65
= control target key start
LH: loop header
LB: loop body
LE: loop exit
PB: predicated region body
PF: predicated region fallthrough
CT: control target
= control target key end

     0   :  { %s6_s6 = smov 3  ;;  %s13_s11 = smov 3  ;;  %vm3_vm0 = vcmask 261120   ;;  %vm10_vm1 = vcmask 1048320   ;;  %vm17_vm2 = vcmask 785920   ;;  %vm24_vm3 = vcmask 523520   ;;  %s90_s0 = inlined_call_operand.vmem [shape: f32[9,32], index: 0, kind: input, shape index: {}]   ;;  %s91_s1 = inlined_call_operand.vmem [shape: f32[1,288], index: 1, kind: output, shape index: {}]  }
   0x1   :  { %v2_v0 = vld [vmem:[%s90_s0] ss:$4 sm:$0x7]   ;;  %v48_v1 = vld [vmem:[%s90_s0 + $0x3] ss:$4 sm:%s6_s6]   ;;  %s56_s12 = smov 96  }
   0x2   :  { %8 = vrot.lane.b32.xlu0 %v48_v1, %s56_s12  ;;  %s20_s13 = smov 3  ;;  %4 = vst.msk [vmem:[#allocation0] ss:$8 sm:$0x7] %vm3_vm0, %v2_v0   ;;  %v49_v2 = vld [vmem:[%s90_s0 + $0x2] ss:$4 sm:%s13_s11]  }
   0x3   :  { %v50_v3 = vld [vmem:[%s90_s0 + $0x1] ss:$4 sm:%s20_s13]   ;;  %s57_s0 = smov 32   ;;  %s58_s18 = smov 64  }
   0x4   :  { %22 = vrot.lane.b32.xlu1 %v50_v3, %s57_s0 }
   0x6   :  { %15 = vrot.lane.b32.xlu0 %v49_v2, %s58_s18 }
   0x9   :  { %v41_v4 = vld [vmem:[#allocation0 + $0x10] sm:$0x1] }
   0xa   :  { %52 = vst [vmem:[%s91_s1 + $0x2] sm:$0x1] %v41_v4 }
  0x74   :  { %v9_v5 = vpop.permute.xlu0 %8  }
  0x75   :  { %11 = vst.msk [vmem:[#allocation0] ss:$8 sm:$0x3] %vm10_vm1, %v9_v5  }
  0x76   :  { %v23_v6 = vpop.permute.xlu1 %22  }
  0x78   :  { %v16_v7 = vpop.permute.xlu0 %15  }
  0x79   :  { %18 = vst.msk [vmem:[#allocation0] ss:$8 sm:$0x3] %vm17_vm2, %v16_v7  }
  0x7a   :  { %25 = vst.msk [vmem:[#allocation0] ss:$8 sm:$0x3] %vm24_vm3, %v23_v6  }
  0x81   :  { %v30_v8 = vld [vmem:[#allocation0] sm:$0x1]  ;;  %v35_v9 = vld [vmem:[#allocation0 + $0x8] sm:$0x1] }
  0x82   :  { %33 = vst [vmem:[%s91_s1] sm:$0x1] %v30_v8  ;;  %51 = vst [vmem:[%s91_s1 + $0x1] sm:$0x1] %v35_v9 }

// kernel: unet_forward.10
= control target key start
LH: loop header
LB: loop body
LE: loop exit
PB: predicated region body
PF: predicated region fallthrough
CT: control target
= control target key end

     0   :  { %v45_v6 = vlaneseq  ;;  %vm263_vm0 = vcmask 261120   ;;  %vm390_vm1 = vcmask 1040384   ;;  %s657_s1 = inlined_call_operand.vmem [shape: bf16[288,128], index: 1, kind: input, shape index: {}]   ;;  %s658_s0 = inlined_call_operand.vmem [shape: bf16[32,288], index: 0, kind: input, shape index: {}]   ;;  %s659_s2 = inlined_call_operand.vmem [shape: f32[1,288], index: 2, kind: input, shape index: {}]   ;;  %s660_s3 = inlined_call_operand.vmem [shape: f32[1,288], index: 3, kind: input, shape index: {}]   ;;  %s661_s4 = inlined_call_operand.vmem [shape: f32[1,128], index: 4, kind: input, shape index: {}]   ;;  %s662_s5 = inlined_call_operand.vmem [shape: bf16[32,128], index: 5, kind: output, shape index: {0}]   ;;  %s663_s6 = inlined_call_operand.vmem [shape: f32[1,2,128], index: 6, kind: output, shape index: {1}]  }
   0x1   :  { %v512_v0 = vld [vmem:[%s657_s1 + $0x78] sm:$0xff]   ;;  %v514_v2 = vld [vmem:[%s657_s1 + $0x70] sm:$0xff]   ;;  %v516_v4 = vld [vmem:[%s657_s1 + $0x68] sm:$0xff]  }
   0x2   :  { %v513_v1 = vld [vmem:[%s657_s1 + $0x38] sm:$0xff]   ;;  %472 = vmatprep.subr.bf16.mxu0 %v512_v0  ;;  %v515_v3 = vld [vmem:[%s657_s1 + $0x30] sm:$0xff]   ;;  %v517_v5 = vld [vmem:[%s657_s1 + $0x28] sm:$0xff]   ;;  %v46_v9 = vshrl.u32 %v45_v6, 7 }
   0x3   :  { %473 = vmatpush3.bf16.msra.mxu0 %v513_v1  ;;  %v518_v7 = vld [vmem:[%s657_s1 + $0x60] sm:$0xff]   ;;  %v520_v10 = vld [vmem:[%s657_s1 + $0x58] sm:$0xff]   ;;  %v525_v11 = vld [vmem:[%s657_s1 + $0x88] sm:$0xff]  }
   0x4   :  { %474 = vmatprep.subr.bf16.mxu0 %v514_v2  ;;  %v519_v8 = vld [vmem:[%s657_s1 + $0x20] sm:$0xff]   ;;  %v521_v12 = vld [vmem:[%s657_s1 + $0x18] sm:$0xff]   ;;  %v522_v13 = vld [vmem:[%s657_s1 + $0x50] sm:$0xff]   ;;  %504 = vmatprep.subr.bf16.mxu1 %v525_v11  ;;  %v51_v14 = vsub.s32 1, %v46_v9  ;;  %v55_v16 = vsub.s32 2, %v46_v9  ;;  %v47_v18 = vsub.s32 0, %v46_v9 }
   0x5   :  { %505 = vmatpush3.bf16.msra.mxu1 %v525_v11  ;;  %v528_v15 = vld [vmem:[%s657_s1 + $0x80] sm:$0xff]   ;;  %v523_v17 = vld [vmem:[%s657_s1 + $0x10] sm:$0xff]   ;;  %v524_v29 = vld [vmem:[%s657_s1 + $0x48] sm:$0xff]  }
   0x6   :  { %506 = vmatprep.subr.bf16.mxu1 %v528_v15  ;;  %v23_v19 = vld [vmem:[%s658_s0] sm:$0xff]  ;;  %v25_v20 = vld [vmem:[%s658_s0 + $0xc] sm:$0xff]  ;;  %v24_v27 = vld [vmem:[%s658_s0 + $0x8] ss:$12 sps:$4 sm:$0xff]  }
   0x7   :  { %475 = vmatpush3.bf16.msra.mxu0 %v515_v3  ;;  %v31_v21 = vld [vmem:[%s659_s2] sm:$0x7]  ;;  %v32_v22 = vunpack.c.l.bf16 %v23_v19  ;;  %v33_v23 = vunpack.c.h.bf16 %v23_v19  ;;  %v35_v24 = vunpack.c.l.bf16 %v25_v20  ;;  %v36_v25 = vunpack.c.h.bf16 %v25_v20  ;;  %v526_v42 = vld [vmem:[%s657_s1 + $0x8] sm:$0xff]   ;;  %v27_v56 = vld [vmem:[%s658_s0 + $0x18] sm:$0xff] }
   0x8   :  { %476 = vmatprep.subr.bf16.mxu0 %v516_v4  ;;  %v72_v26 = vld [vmem:[%s660_s3] sm:$0x7]  ;;  %v52_v30 = vrot.slane %v31_v21, %v51_v14  ;;  %v34_v32 = vunpack.c.l.bf16 %v24_v27  ;;  %v37_v33 = vunpack.c.h.bf16 %v24_v27  ;;  %v56_v34 = vrot.slane %v31_v21, %v55_v16  ;;  %v29_v61 = vld [vmem:[%s658_s0 + $0x24] sm:$0xff] }
   0x9   :  { %v28_v28 = vld [vmem:[%s658_s0 + $0x20] ss:$12 sps:$4 sm:$0xff]   ;;  %507 = vmatpush3.bf16.msra.mxu1 %v528_v15  ;;  %v81_v31 = vrot.slane %v72_v26, %v51_v14  ;;  %v85_v35 = vrot.slane %v72_v26, %v55_v16  ;;  %v48_v36 = vrot.slane %v31_v21, %v47_v18  ;;  %v77_v37 = vrot.slane %v72_v26, %v47_v18 }
   0xa   :  { %v61_v38 = vmul.f32 %v52_v30, %v33_v23  ;;  %v64_v39 = vmul.f32 %v52_v30, %v36_v25  ;;  %v40_v40 = vunpack.c.l.bf16 %v28_v28  ;;  %v43_v41 = vunpack.c.h.bf16 %v28_v28  ;;  %v527_v47 = vld [vmem:[%s657_s1 + $0x40] sm:$0xff]  }
   0xb   :  { %477 = vmatpush3.bf16.msra.mxu0 %v517_v5  ;;  %v62_v43 = vmul.f32 %v56_v34, %v34_v32  ;;  %v65_v44 = vmul.f32 %v56_v34, %v37_v33  ;;  %v60_v45 = vmul.f32 %v48_v36, %v32_v22  ;;  %v63_v46 = vmul.f32 %v48_v36, %v35_v24  ;;  %v529_v62 = vld [vmem:[%s657_s1] sm:$0xff]  }
   0xc   :  { %478 = vmatprep.subr.bf16.mxu0 %v518_v7  ;;  %v90_v48 = vadd.f32 %v81_v31, %v61_v38  ;;  %v93_v49 = vadd.f32 %v81_v31, %v64_v39  ;;  %v68_v50 = vmul.f32 %v56_v34, %v40_v40  ;;  %v71_v51 = vmul.f32 %v56_v34, %v43_v41 }
   0xd   :  { %v91_v52 = vadd.f32 %v85_v35, %v62_v43  ;;  %v94_v53 = vadd.f32 %v85_v35, %v65_v44  ;;  %v89_v54 = vadd.f32 %v77_v37, %v60_v45  ;;  %v92_v55 = vadd.f32 %v77_v37, %v63_v46 }
   0xe   :  { %v102_v57 = vmax.f32 %v90_v48, 0.0  ;;  %v105_v58 = vmax.f32 %v93_v49, 0.0  ;;  %v97_v59 = vadd.f32 %v85_v35, %v68_v50  ;;  %v100_v60 = vadd.f32 %v85_v35, %v71_v51 }
   0xf   :  { %479 = vmatpush3.bf16.msra.mxu0 %v519_v8  ;;  %v103_v63 = vmax.f32 %v91_v52, 0.0  ;;  %v106_v0 = vmax.f32 %v94_v53, 0.0  ;;  %v101_v1 = vmax.f32 %v89_v54, 0.0  ;;  %v104_v2 = vmax.f32 %v92_v55, 0.0 }
  0x10   :  { %480 = vmatprep.subr.bf16.mxu0 %v520_v10  ;;  %v114_v3 = vpack.c.bf16 %v105_v58, %v102_v57  ;;  %v109_v4 = vmax.f32 %v97_v59, 0.0  ;;  %v112_v5 = vmax.f32 %v100_v60, 0.0  ;;  %v39_v6 = vunpack.c.h.bf16 %v27_v56 }
  0x11   :  { %v115_v7 = vpack.c.bf16 %v106_v0, %v103_v63  ;;  %v42_v8 = vunpack.c.h.bf16 %v29_v61  ;;  %v38_v9 = vunpack.c.l.bf16 %v27_v56  ;;  %v113_v10 = vpack.c.bf16 %v104_v2, %v101_v1 }
  0x12   :  { %302 = vmatprep.mubr.bf16.mxu0 %v114_v3  ;;  %v118_v11 = vpack.c.bf16 %v112_v5, %v109_v4 }
  0x13   :  { %481 = vmatpush3.bf16.msra.mxu0 %v521_v12  ;;  %v67_v12 = vmul.f32 %v52_v30, %v39_v6  ;;  %508 = vmatprep.mubr.msk.bf16.mxu1 %vm263_vm0, %v115_v7  ;;  %v70_v14 = vmul.f32 %v52_v30, %v42_v8  ;;  %v66_v15 = vmul.f32 %v48_v36, %v38_v9 }
  0x14   :  { %482 = vmatprep.subr.bf16.mxu0 %v522_v13  ;;  %v41_v13 = vunpack.c.l.bf16 %v29_v61  ;;  %509 = vmatmul.mubr.msk.bf16.vlgmr.msra.gmra.mxu1 %vm263_vm0, %v118_v11 }
  0x15   :  { %v96_v16 = vadd.f32 %v81_v31, %v67_v12  ;;  %v99_v18 = vadd.f32 %v81_v31, %v70_v14  ;;  %v95_v19 = vadd.f32 %v77_v37, %v66_v15 }
  0x17   :  { %483 = vmatpush3.bf16.msra.mxu0 %v523_v17  ;;  %v69_v17 = vmul.f32 %v48_v36, %v41_v13  ;;  %v108_v20 = vmax.f32 %v96_v16, 0.0  ;;  %v111_v22 = vmax.f32 %v99_v18, 0.0  ;;  %v107_v23 = vmax.f32 %v95_v19, 0.0 }
  0x18   :  { %484 = vmatprep.subr.bf16.mxu0 %v524_v29 }
  0x19   :  { %v98_v21 = vadd.f32 %v77_v37, %v69_v17  ;;  %v117_v25 = vpack.c.bf16 %v111_v22, %v108_v20  ;;  %v452_v37 = vld [vmem:[%s661_s4] ss:$0 sm:$0xff] }
  0x1b   :  { %485 = vmatpush3.bf16.msra.mxu0 %v526_v42  ;;  %v110_v24 = vmax.f32 %v98_v21, 0.0 }
  0x1c   :  { %486 = vmatprep.subr.bf16.mxu0 %v527_v47 }
  0x1d   :  { %v116_v26 = vpack.c.bf16 %v110_v24, %v107_v23 }
  0x1f   :  { %487 = vmatpush3.bf16.msra.mxu0 %v529_v62 }
  0x22   :  { %303 = vmatmul.mubr.bf16.vlgmr.msra.gmra.mxu0 %v113_v10 }
  0x23   :  { %310 = vmatprep.mubr.bf16.mxu0 %v117_v25 }
  0x2a   :  { %311 = vmatmul.mubr.bf16.gmra.mxu0 %v116_v26 }
  0xd4   :  { %v510_v27 = vpop.f32.mrf.mxu1 }
  0xd6   :  { %v353_v29 = vpop.f32.mrf.mxu1 }
  0xd8   :  { %v511_v34 = vpop.f32.mrf.mxu1 }
  0xda   :  { %v356_v38 = vpop.f32.mrf.mxu1 }
  0xe2   :  { %v488_v28 = vpop.f32.mrf.mxu0 }
  0xe4   :  { %v489_v30 = vpop.f32.mrf.mxu0 }
  0xe5   :  { %v490_v32 = vadd.f32 %v489_v30, %v488_v28 }
  0xe6   :  { %v491_v33 = vpop.f32.mrf.mxu0 }
  0xe7   :  { %v354_v31 = vadd.f32 %v490_v32, %v353_v29 }
  0xe8   :  { %v492_v35 = vpop.f32.mrf.mxu0 }
  0xe9   :  { %v493_v36 = vadd.f32 %v492_v35, %v491_v33  ;;  %v400_v42 = vadd.f32 %v452_v37, %v354_v31  ;;  %v377_v50 = vmul.f32 %v354_v31, %v354_v31 }
  0xea   :  { %v494_v39 = vpop.f32.mrf.mxu0 }
  0xeb   :  { %v357_v40 = vadd.f32 %v493_v36, %v356_v38 }
  0xec   :  { %v495_v41 = vpop.f32.mrf.mxu0 }
  0xed   :  { %v401_v43 = vadd.f32 %v452_v37, %v357_v40  ;;  %v496_v44 = vadd.f32 %v495_v41, %v494_v39  ;;  %v378_v46 = vmul.f32 %v357_v40, %v357_v40  ;;  %v368_v51 = vadd.f32 %v357_v40, %v354_v31 }
  0xee   :  { %v497_v45 = vpop.f32.mrf.mxu0 }
  0xef   :  { %v464_v47 = vpack.c.bf16 %v401_v43, %v400_v42  ;;  %v362_v48 = vadd.f32 %v510_v27, %v496_v44  ;;  %v381_v54 = vadd.f32 %v378_v46, %v377_v50 }
  0xf0   :  { %v498_v49 = vpop.f32.mrf.mxu0 }
  0xf1   :  { %465 = vst [vmem:[%s662_s5] sm:$0xff] %v464_v47   ;;  %v379_v52 = vmul.f32 %v362_v48, %v362_v48  ;;  %v499_v53 = vadd.f32 %v498_v49, %v497_v45  ;;  %v369_v55 = vadd.f32 %v368_v51, %v362_v48  ;;  %v402_v57 = vadd.f32 %v452_v37, %v362_v48 }
  0xf3   :  { %v365_v56 = vadd.f32 %v511_v34, %v499_v53  ;;  %v382_v58 = vadd.f32 %v381_v54, %v379_v52 }
  0xf5   :  { %v370_v59 = vadd.f32 %v369_v55, %v365_v56  ;;  %v380_v60 = vmul.f32 %v365_v56, %v365_v56  ;;  %v403_v61 = vadd.f32 %v452_v37, %v365_v56 }
  0xf7   :  { %v371_v62 = vrot.slane %v370_v59, 4  ;;  %v383_v63 = vadd.f32 %v382_v58, %v380_v60  ;;  %v469_v0 = vpack.c.bf16 %v403_v61, %v402_v57 }
  0xf9   :  { %v372_v1 = vadd.f32 %v371_v62, %v370_v59  ;;  %v384_v2 = vrot.slane %v383_v63, 4  ;;  %471 = vst [vmem:[%s662_s5 + $0x8] sm:$0xff] %v469_v0  }
  0xfb   :  { %v373_v3 = vrot.slane %v372_v1, 2  ;;  %v385_v4 = vadd.f32 %v384_v2, %v383_v63 }
  0xfd   :  { %v374_v5 = vadd.f32 %v373_v3, %v372_v1  ;;  %v386_v6 = vrot.slane %v385_v4, 2 }
  0xff   :  { %v375_v7 = vrot.slane %v374_v5, 1  ;;  %v387_v8 = vadd.f32 %v386_v6, %v385_v4 }
 0x101   :  { %v388_v9 = vrot.slane %v387_v8, 1  ;;  %v376_v10 = vadd.f32 %v375_v7, %v374_v5 }
 0x103   :  { %v389_v11 = vadd.f32 %v388_v9, %v387_v8 }
 0x105   :  { %v391_v12 = vsel %vm390_vm1, %v376_v10, %v389_v11 }
 0x106   :  { %392 = vst [vmem:[%s663_s6] sm:$0x3] %v391_v12 }

// kernel: tile.75
= control target key start
LH: loop header
LB: loop body
LE: loop exit
PB: predicated region body
PF: predicated region fallthrough
CT: control target
= control target key end

     0   :  { %s28_s0 = inlined_call_operand.vmem [shape: f32[16], index: 0, kind: input, shape index: {}]   ;;  %s29_s1 = inlined_call_operand.vmem [shape: f32[9,16], index: 1, kind: output, shape index: {}]  }
   0x1   :  { %v4_v0 = vld [vmem:[%s28_s0] ss:$0 sm:$0xff] }
   0x2   :  { %5 = vst [vmem:[%s29_s1] sm:$0xff] %v4_v0  ;;  %8 = vst [vmem:[%s29_s1 + $0x8] sm:$0xff] %v4_v0 }

// kernel: tile.80
= control target key start
LH: loop header
LB: loop body
LE: loop exit
PB: predicated region body
PF: predicated region fallthrough
CT: control target
= control target key end

     0   :  { %s77_s10 = smov 112   ;;  %s78_s11 = smov 80   ;;  %vm4_vm0 = vcmask 130048   ;;  %vm10_vm1 = vcmask 1048448   ;;  %vm16_vm2 = vcmask 917248   ;;  %vm22_vm3 = vcmask 786048   ;;  %s124_s0 = inlined_call_operand.vmem [shape: f32[9,16], index: 0, kind: input, shape index: {}]   ;;  %s125_s1 = inlined_call_operand.vmem [shape: f32[1,144], index: 1, kind: output, shape index: {}]  }
   0x1   :  { %v62_v0 = vld [vmem:[%s124_s0 + $0x7] sm:$0x1]   ;;  %v64_v1 = vld [vmem:[%s124_s0 + $0x5] sm:$0x1]   ;;  %v63_v2 = vld [vmem:[%s124_s0 + $0x6] sm:$0x1]  }
   0x2   :  { %8 = vrot.lane.b32.xlu0 %v62_v0, %s77_s10  ;;  %20 = vrot.lane.b32.xlu1 %v64_v1, %s78_s11  ;;  %v65_v3 = vld [vmem:[%s124_s0 + $0x4] sm:$0x1]   ;;  %s2_s16 = smov 3  ;;  %s79_s19 = smov 96   ;;  %v66_v5 = vld [vmem:[%s124_s0 + $0x3] sm:$0x1]  }
   0x3   :  { %v3_v4 = vld [vmem:[%s124_s0] ss:$8 sm:%s2_s16]   ;;  %s80_s20 = smov 64   ;;  %v67_v6 = vld [vmem:[%s124_s0 + $0x2] sm:$0x1]   ;;  %s81_s25 = smov 48  }
   0x4   :  { %5 = vst.msk [vmem:[#allocation0] ss:$8 sm:$0x3] %vm4_vm0, %v3_v4   ;;  %s82_s26 = smov 32   ;;  %v68_v7 = vld [vmem:[%s124_s0 + $0x1] sm:$0x1]  }
   0x5   :  { %s83_s0 = smov 16   ;;  %vm28_vm4 = vcmask 654848   ;;  %vm34_vm5 = vcmask 523648   ;;  %vm40_vm6 = vcmask 392448   ;;  %vm46_vm7 = vcmask 261248  }
   0x6   :  { %14 = vrot.lane.b32.xlu0 %v63_v2, %s79_s19  ;;  %26 = vrot.lane.b32.xlu1 %v65_v3, %s80_s20 }
   0xa   :  { %32 = vrot.lane.b32.xlu0 %v66_v5, %s81_s25  ;;  %38 = vrot.lane.b32.xlu1 %v67_v6, %s82_s26 }
   0xb   :  { %v57_v8 = vld [vmem:[#allocation0 + $0x8] sm:$0x1] }
   0xc   :  { %69 = vst [vmem:[%s125_s1 + $0x1] sm:$0x1] %v57_v8 }
   0xe   :  { %44 = vrot.lane.b32.xlu0 %v68_v7, %s83_s0 }
  0x74   :  { %v9_v9 = vpop.permute.xlu0 %8   ;;  %v21_v10 = vpop.permute.xlu1 %20  }
  0x75   :  { %11 = vst.msk [vmem:[#allocation0] sm:$0x1] %vm10_vm1, %v9_v9  }
  0x78   :  { %v15_v11 = vpop.permute.xlu0 %14   ;;  %v27_v12 = vpop.permute.xlu1 %26  }
  0x79   :  { %17 = vst.msk [vmem:[#allocation0] sm:$0x1] %vm16_vm2, %v15_v11  }
  0x7a   :  { %23 = vst.msk [vmem:[#allocation0] sm:$0x1] %vm22_vm3, %v21_v10  }
  0x7b   :  { %29 = vst.msk [vmem:[#allocation0] sm:$0x1] %vm28_vm4, %v27_v12  }
  0x7c   :  { %v33_v13 = vpop.permute.xlu0 %32   ;;  %v39_v14 = vpop.permute.xlu1 %38  }
  0x7d   :  { %35 = vst.msk [vmem:[#allocation0] sm:$0x1] %vm34_vm5, %v33_v13  }
  0x7e   :  { %41 = vst.msk [vmem:[#allocation0] sm:$0x1] %vm40_vm6, %v39_v14  }
  0x80   :  { %v45_v15 = vpop.permute.xlu0 %44  }
  0x81   :  { %47 = vst.msk [vmem:[#allocation0] sm:$0x1] %vm46_vm7, %v45_v15  }
  0x88   :  { %v52_v16 = vld [vmem:[#allocation0] sm:$0x1] }
  0x89   :  { %55 = vst [vmem:[%s125_s1] sm:$0x1] %v52_v16 }

// kernel: tile.70
= control target key start
LH: loop header
LB: loop body
LE: loop exit
PB: predicated region body
PF: predicated region fallthrough
CT: control target
= control target key end

     0   :  { %s22_s0 = inlined_call_operand.vmem [shape: f32[4], index: 0, kind: input, shape index: {}]   ;;  %s23_s1 = inlined_call_operand.vmem [shape: f32[4,4], index: 1, kind: output, shape index: {}]  }
   0x1   :  { %v4_v0 = vld [vmem:[%s22_s0] ss:$0 sm:$0xff] }
   0x2   :  { %5 = vst [vmem:[%s23_s1] sm:$0xf] %v4_v0 }

// kernel: tile.71
= control target key start
LH: loop header
LB: loop body
LE: loop exit
PB: predicated region body
PF: predicated region fallthrough
CT: control target
= control target key end

     0   :  { %vm8_vm0 = vcmask 31744   ;;  %s40_s8 = smov 4   ;;  %s41_s9 = smov 8   ;;  %vm14_vm1 = vcmask 130144   ;;  %vm20_vm2 = vcmask 97344   ;;  %vm26_vm3 = vcmask 64544   ;;  %s58_s0 = inlined_call_operand.vmem [shape: f32[4,4], index: 0, kind: input, shape index: {}]   ;;  %s59_s1 = inlined_call_operand.vmem [shape: f32[16], index: 1, kind: output, shape index: {}]  }
   0x1   :  { %v5_v0 = vld [vmem:[%s58_s0] sm:$0xf]  ;;  %s39_s0 = smov 12  }
   0x2   :  { %6 = vst [vmem:[#allocation1] sm:$0xf] %v5_v0 }
   0x9   :  { %v11_v1 = vld [vmem:[#allocation1 + $0x3] sm:$0x1]   ;;  %v23_v2 = vld [vmem:[#allocation1 + $0x1] sm:$0x1]   ;;  %v7_v3 = vld [vmem:[#allocation1] sm:$0x1]  }
   0xa   :  { %12 = vrot.lane.b32.xlu0 %v11_v1, %s39_s0  ;;  %24 = vrot.lane.b32.xlu1 %v23_v2, %s40_s8  ;;  %v17_v4 = vld [vmem:[#allocation1 + $0x2] sm:$0x1]   ;;  %9 = vst.msk [vmem:[#allocation0] sm:$0x1] %vm8_vm0, %v7_v3  }
   0xe   :  { %18 = vrot.lane.b32.xlu0 %v17_v4, %s41_s9 }
  0x7c   :  { %v13_v5 = vpop.permute.xlu0 %12   ;;  %v25_v6 = vpop.permute.xlu1 %24  }
  0x7d   :  { %15 = vst.msk [vmem:[#allocation0] sm:$0x1] %vm14_vm1, %v13_v5  }
  0x80   :  { %v19_v7 = vpop.permute.xlu0 %18  }
  0x81   :  { %21 = vst.msk [vmem:[#allocation0] sm:$0x1] %vm20_vm2, %v19_v7  }
  0x82   :  { %27 = vst.msk [vmem:[#allocation0] sm:$0x1] %vm26_vm3, %v25_v6  }
  0x89   :  { %v32_v8 = vld [vmem:[#allocation0] sm:$0x1] }
  0x8a   :  { %35 = vst [vmem:[%s59_s1] sm:$0x1] %v32_v8 }

// kernel: unet_forward.11
= control target key start
LH: loop header
LB: loop body
LE: loop exit
PB: predicated region body
PF: predicated region fallthrough
CT: control target
= control target key end

     0   :  { %v71_v0 = vlaneseq  ;;  %v520_v1 = vmov 0   ;;  %vm284_vm0 = vcmask 130048   ;;  %s810_s1 = inlined_call_operand.vmem [shape: bf16[144,128], index: 1, kind: input, shape index: {}]   ;;  %s811_s0 = inlined_call_operand.vmem [shape: bf16[128,144], index: 0, kind: input, shape index: {}]   ;;  %s812_s2 = inlined_call_operand.vmem [shape: f32[1,144], index: 2, kind: input, shape index: {}]   ;;  %s813_s3 = inlined_call_operand.vmem [shape: f32[1,144], index: 3, kind: input, shape index: {}]   ;;  %s814_s4 = inlined_call_operand.vmem [shape: f32[1,128], index: 4, kind: input, shape index: {}]   ;;  %s815_s5 = inlined_call_operand.vmem [shape: f32[128,128], index: 5, kind: output, shape index: {}]  }
   0x1   :  { %309 = vmatprep.subr.bf16.mxu0 %v520_v1  ;;  %460 = vmatprep.subr.bf16.mxu1 %v520_v1  ;;  %v479_v2 = vld [vmem:[%s810_s1 + $0x38] sm:$0xff]   ;;  %v480_v3 = vld [vmem:[%s810_s1 + $0x30] sm:$0xff]   ;;  %v481_v5 = vld [vmem:[%s810_s1 + $0x28] sm:$0xff]  }
   0x2   :  { %310 = vmatpush1.bf16.msra.mxu0 %v479_v2  ;;  %469 = vmatpush1.bf16.msra.mxu1 %v479_v2  ;;  %v72_v4 = vshrl.u32 %v71_v0, 7  ;;  %v482_v8 = vld [vmem:[%s810_s1 + $0x20] sm:$0xff]   ;;  %v22_v10 = vld [vmem:[%s811_s0 + $0x8] sm:$0xff]  ;;  %v600_v25 = vld [vmem:[%s811_s0 + $0x10] sm:$0xff] }
   0x3   :  { %311 = vmatprep.subr.bf16.mxu0 %v520_v1  ;;  %461 = vmatprep.subr.bf16.mxu1 %v520_v1  ;;  %v21_v9 = vld [vmem:[%s811_s0] sm:$0xff]  ;;  %v40_v14 = vunpack.c.l.bf16 %v22_v10  ;;  %v41_v15 = vunpack.c.h.bf16 %v22_v10  ;;  %v30_v18 = vld [vmem:[%s811_s0 + $0x48] sm:$0xff]  ;;  %v24_v30 = vld [vmem:[%s811_s0 + $0x18] sm:$0xff]  ;;  %v43_v38 = vunpack.c.h.bf16 %v600_v25  ;;  %v42_v61 = vunpack.c.l.bf16 %v600_v25 }
   0x4   :  { %v73_v6 = vsub.s32 0, %v72_v4  ;;  %v77_v7 = vsub.s32 1, %v72_v4  ;;  %v37_v11 = vld [vmem:[%s812_s2] sm:$0x3]  ;;  %v38_v12 = vunpack.c.l.bf16 %v21_v9  ;;  %v39_v13 = vunpack.c.h.bf16 %v21_v9  ;;  %v483_v31 = vld [vmem:[%s810_s1 + $0x18] sm:$0xff]   ;;  %v31_v46 = vld [vmem:[%s811_s0 + $0x50] sm:$0xff] }
   0x5   :  { %v113_v16 = vld [vmem:[%s813_s3] sm:$0x3]  ;;  %v57_v24 = vunpack.c.h.bf16 %v30_v18  ;;  %v56_v37 = vunpack.c.l.bf16 %v30_v18  ;;  %v45_v41 = vunpack.c.h.bf16 %v24_v30  ;;  %v484_v47 = vld [vmem:[%s810_s1 + $0x10] sm:$0xff]   ;;  %v32_v51 = vld [vmem:[%s811_s0 + $0x58] sm:$0xff]  ;;  %v59_v57 = vunpack.c.h.bf16 %v31_v46 }
   0x6   :  { %312 = vmatpush1.bf16.msra.mxu0 %v480_v3  ;;  %470 = vmatpush1.bf16.msra.mxu1 %v480_v3  ;;  %v29_v17 = vld [vmem:[%s811_s0 + $0x40] sm:$0xff]  ;;  %v589_v19 = vrot.slane %v37_v11, %v73_v6  ;;  %v591_v20 = vrot.slane %v37_v11, %v77_v7  ;;  %v593_v21 = vrot.slane %v113_v16, %v73_v6  ;;  %v61_v60 = vunpack.c.h.bf16 %v32_v51  ;;  %v485_v62 = vld [vmem:[%s810_s1 + $0x8] sm:$0xff]  }
   0x7   :  { %313 = vmatprep.subr.bf16.mxu0 %v520_v1  ;;  %462 = vmatprep.subr.bf16.mxu1 %v520_v1  ;;  %v595_v22 = vrot.slane %v113_v16, %v77_v7  ;;  %v55_v23 = vunpack.c.h.bf16 %v29_v17  ;;  %v54_v28 = vunpack.c.l.bf16 %v29_v17  ;;  %v44_v2 = vunpack.c.l.bf16 %v24_v30  ;;  %v650_v4 = vld [vmem:[%s811_s0 + $0x20] sm:$0xff] }
   0x8   :  { %v82_v26 = vmul.f32 %v591_v20, %v39_v13  ;;  %v84_v27 = vmul.f32 %v591_v20, %v41_v15  ;;  %v81_v29 = vmul.f32 %v589_v19, %v38_v12  ;;  %v100_v33 = vmul.f32 %v591_v20, %v57_v24  ;;  %v26_v12 = vld [vmem:[%s811_s0 + $0x28] sm:$0xff]  ;;  %v33_v16 = vld [vmem:[%s811_s0 + $0x60] sm:$0xff] }
   0x9   :  { %v98_v32 = vmul.f32 %v591_v20, %v55_v23  ;;  %v83_v34 = vmul.f32 %v589_v19, %v40_v14  ;;  %v97_v45 = vmul.f32 %v589_v19, %v54_v28  ;;  %v99_v53 = vmul.f32 %v589_v19, %v56_v37  ;;  %v486_v17 = vld [vmem:[%s810_s1] sm:$0xff]  }
   0xa   :  { %314 = vmatpush1.bf16.msra.mxu0 %v481_v5  ;;  %471 = vmatpush1.bf16.msra.mxu1 %v481_v5  ;;  %v126_v35 = vadd.f32 %v595_v22, %v82_v26  ;;  %v128_v36 = vadd.f32 %v595_v22, %v84_v27  ;;  %v144_v40 = vadd.f32 %v595_v22, %v100_v33  ;;  %v58_v3 = vunpack.c.l.bf16 %v31_v46  ;;  %v34_v26 = vld [vmem:[%s811_s0 + $0x68] sm:$0xff] }
   0xb   :  { %315 = vmatprep.subr.bf16.mxu0 %v520_v1  ;;  %463 = vmatprep.subr.bf16.mxu1 %v520_v1  ;;  %v142_v39 = vadd.f32 %v595_v22, %v98_v32  ;;  %v125_v44 = vadd.f32 %v593_v21, %v81_v29  ;;  %v127_v50 = vadd.f32 %v593_v21, %v83_v34  ;;  %v60_v11 = vunpack.c.l.bf16 %v32_v51 }
   0xc   :  { %v158_v42 = vmax.f32 %v126_v35, 0.0  ;;  %v160_v43 = vmax.f32 %v128_v36, 0.0  ;;  %v176_v49 = vmax.f32 %v144_v40, 0.0  ;;  %v86_v54 = vmul.f32 %v591_v20, %v43_v38 }
   0xd   :  { %v174_v48 = vmax.f32 %v142_v39, 0.0  ;;  %v88_v56 = vmul.f32 %v591_v20, %v45_v41  ;;  %v157_v58 = vmax.f32 %v125_v44, 0.0  ;;  %v640_v59 = vadd.f32 %v593_v21, %v97_v45  ;;  %v487_v39 = vld [vmem:[%s810_s1 + $0x40] sm:$0xff]  }
   0xe   :  { %316 = vmatpush1.bf16.msra.mxu0 %v482_v8  ;;  %472 = vmatpush1.bf16.msra.mxu1 %v482_v8  ;;  %v190_v52 = vpack.c.bf16 %v160_v43, %v158_v42  ;;  %v159_v63 = vmax.f32 %v127_v50, 0.0  ;;  %v102_v0 = vmul.f32 %v591_v20, %v59_v57  ;;  %v143_v5 = vadd.f32 %v593_v21, %v99_v53 }
   0xf   :  { %317 = vmatprep.subr.bf16.mxu0 %v520_v1  ;;  %464 = vmatprep.subr.bf16.mxu1 %v520_v1  ;;  %v198_v55 = vpack.c.bf16 %v176_v49, %v174_v48  ;;  %v130_v6 = vadd.f32 %v595_v22, %v86_v54  ;;  %v104_v7 = vmul.f32 %v591_v20, %v61_v60  ;;  %v47_v15 = vunpack.c.h.bf16 %v650_v4  ;;  %v27_v48 = vld [vmem:[%s811_s0 + $0x30] sm:$0xff] }
  0x10   :  { %452 = vmatprep.mubr.msk.bf16.mxu0 %vm284_vm0, %v190_v52  ;;  %v132_v8 = vadd.f32 %v595_v22, %v88_v56  ;;  %v146_v9 = vadd.f32 %v595_v22, %v102_v0  ;;  %v85_v10 = vmul.f32 %v589_v19, %v42_v61  ;;  %v87_v13 = vmul.f32 %v589_v19, %v44_v2  ;;  %v28_v56 = vld [vmem:[%s811_s0 + $0x38] sm:$0xff]  ;;  %v35_v61 = vld [vmem:[%s811_s0 + $0x70] sm:$0xff] }
  0x11   :  { %456 = vmatprep.mubr.msk.bf16.mxu1 %vm284_vm0, %v198_v55  ;;  %v101_v14 = vmul.f32 %v589_v19, %v58_v3  ;;  %v189_v18 = vpack.c.bf16 %v159_v63, %v157_v58  ;;  %v173_v23 = vmax.f32 %v640_v59, 0.0  ;;  %v148_v24 = vadd.f32 %v595_v22, %v104_v7  ;;  %v36_v3 = vld [vmem:[%s811_s0 + $0x78] sm:$0xff] }
  0x12   :  { %318 = vmatpush1.bf16.msra.mxu0 %v483_v31  ;;  %473 = vmatpush1.bf16.msra.mxu1 %v483_v31  ;;  %v103_v25 = vmul.f32 %v589_v19, %v60_v11  ;;  %v175_v27 = vmax.f32 %v143_v5, 0.0  ;;  %v162_v28 = vmax.f32 %v130_v6, 0.0  ;;  %v49_v29 = vunpack.c.h.bf16 %v26_v12 }
  0x13   :  { %319 = vmatprep.subr.bf16.mxu0 %v520_v1  ;;  %465 = vmatprep.subr.bf16.mxu1 %v520_v1  ;;  %v90_v30 = vmul.f32 %v591_v20, %v47_v15  ;;  %v164_v31 = vmax.f32 %v132_v8, 0.0  ;;  %v178_v32 = vmax.f32 %v146_v9, 0.0  ;;  %v129_v33 = vadd.f32 %v593_v21, %v85_v10 }
  0x14   :  { %v63_v34 = vunpack.c.h.bf16 %v33_v16  ;;  %v131_v35 = vadd.f32 %v593_v21, %v87_v13  ;;  %v145_v36 = vadd.f32 %v593_v21, %v101_v14  ;;  %v92_v37 = vmul.f32 %v591_v20, %v49_v29 }
  0x15   :  { %v65_v38 = vunpack.c.h.bf16 %v34_v26  ;;  %v180_v40 = vmax.f32 %v148_v24, 0.0  ;;  %v147_v41 = vadd.f32 %v593_v21, %v103_v25  ;;  %v134_v42 = vadd.f32 %v595_v22, %v90_v30 }
  0x16   :  { %320 = vmatpush1.bf16.msra.mxu0 %v484_v47  ;;  %474 = vmatpush1.bf16.msra.mxu1 %v484_v47  ;;  %v106_v43 = vmul.f32 %v591_v20, %v63_v34  ;;  %v136_v44 = vadd.f32 %v595_v22, %v92_v37  ;;  %v46_v46 = vunpack.c.l.bf16 %v650_v4  ;;  %v48_v47 = vunpack.c.l.bf16 %v26_v12 }
  0x17   :  { %321 = vmatprep.subr.bf16.mxu0 %v520_v1  ;;  %466 = vmatprep.subr.bf16.mxu1 %v520_v1  ;;  %v108_v45 = vmul.f32 %v591_v20, %v65_v38  ;;  %v197_v49 = vpack.c.bf16 %v175_v27, %v173_v23  ;;  %v192_v50 = vpack.c.bf16 %v164_v31, %v162_v28  ;;  %v161_v51 = vmax.f32 %v129_v33, 0.0 }
  0x18   :  { %v62_v52 = vunpack.c.l.bf16 %v33_v16  ;;  %v163_v53 = vmax.f32 %v131_v35, 0.0  ;;  %v150_v54 = vadd.f32 %v595_v22, %v106_v43  ;;  %v64_v55 = vunpack.c.l.bf16 %v34_v26 }
  0x19   :  { %v200_v57 = vpack.c.bf16 %v180_v40, %v178_v32  ;;  %v177_v58 = vmax.f32 %v145_v36, 0.0  ;;  %v179_v59 = vmax.f32 %v147_v41, 0.0  ;;  %v51_v60 = vunpack.c.h.bf16 %v27_v48 }
  0x1a   :  { %322 = vmatpush1.bf16.msra.mxu0 %v485_v62  ;;  %475 = vmatpush1.bf16.msra.mxu1 %v485_v62  ;;  %v166_v62 = vmax.f32 %v134_v42, 0.0  ;;  %v168_v63 = vmax.f32 %v136_v44, 0.0  ;;  %v89_v0 = vmul.f32 %v589_v19, %v46_v46  ;;  %v91_v2 = vmul.f32 %v589_v19, %v48_v47 }
  0x1b   :  { %323 = vmatprep.subr.bf16.mxu0 %v520_v1  ;;  %467 = vmatprep.subr.bf16.mxu1 %v520_v1  ;;  %v105_v4 = vmul.f32 %v589_v19, %v62_v52  ;;  %v107_v5 = vmul.f32 %v589_v19, %v64_v55  ;;  %v53_v6 = vunpack.c.h.bf16 %v28_v56  ;;  %v182_v7 = vmax.f32 %v150_v54, 0.0 }
  0x1c   :  { %v94_v9 = vmul.f32 %v591_v20, %v51_v60  ;;  %v67_v10 = vunpack.c.h.bf16 %v35_v61  ;;  %v191_v11 = vpack.c.bf16 %v163_v53, %v161_v51  ;;  %v199_v12 = vpack.c.bf16 %v179_v59, %v177_v58 }
  0x1d   :  { %v96_v13 = vmul.f32 %v591_v20, %v53_v6  ;;  %v69_v14 = vunpack.c.h.bf16 %v36_v3  ;;  %v194_v15 = vpack.c.bf16 %v168_v63, %v166_v62  ;;  %v133_v16 = vadd.f32 %v593_v21, %v89_v0 }
  0x1e   :  { %324 = vmatpush1.bf16.msra.mxu0 %v486_v17  ;;  %476 = vmatpush1.bf16.msra.mxu1 %v486_v17  ;;  %v135_v17 = vadd.f32 %v593_v21, %v91_v2  ;;  %v149_v23 = vadd.f32 %v593_v21, %v105_v4  ;;  %v151_v24 = vadd.f32 %v593_v21, %v107_v5  ;;  %v50_v26 = vunpack.c.l.bf16 %v27_v48 }
  0x1f   :  { %339 = vmatprep.subr.bf16.mxu0 %v520_v1  ;;  %468 = vmatprep.subr.bf16.mxu1 %v520_v1  ;;  %v152_v1 = vadd.f32 %v595_v22, %v108_v45  ;;  %v112_v25 = vmul.f32 %v591_v20, %v69_v14  ;;  %v138_v28 = vadd.f32 %v595_v22, %v94_v9  ;;  %v52_v29 = vunpack.c.l.bf16 %v28_v56 }
  0x20   :  { %v66_v30 = vunpack.c.l.bf16 %v35_v61  ;;  %v140_v31 = vadd.f32 %v595_v22, %v96_v13  ;;  %v68_v34 = vunpack.c.l.bf16 %v36_v3  ;;  %v165_v35 = vmax.f32 %v133_v16, 0.0 }
  0x21   :  { %v184_v8 = vmax.f32 %v152_v1, 0.0  ;;  %v156_v33 = vadd.f32 %v595_v22, %v112_v25  ;;  %v167_v36 = vmax.f32 %v135_v17, 0.0  ;;  %v181_v37 = vmax.f32 %v149_v23, 0.0 }
  0x22   :  { %340 = vmatpush2.bf16.msra.mxu0 %v487_v39  ;;  %477 = vmatpush2.bf16.msra.mxu1 %v487_v39  ;;  %v183_v38 = vmax.f32 %v151_v24, 0.0  ;;  %v93_v39 = vmul.f32 %v589_v19, %v50_v26  ;;  %v109_v40 = vmul.f32 %v589_v19, %v66_v30  ;;  %v111_v41 = vmul.f32 %v589_v19, %v68_v34 }
  0x23   :  { %v202_v27 = vpack.c.bf16 %v184_v8, %v182_v7  ;;  %v172_v42 = vmax.f32 %v140_v31, 0.0  ;;  %v188_v44 = vmax.f32 %v156_v33, 0.0  ;;  %v193_v45 = vpack.c.bf16 %v167_v36, %v165_v35 }
  0x24   :  { %v201_v46 = vpack.c.bf16 %v183_v38, %v181_v37  ;;  %v137_v47 = vadd.f32 %v593_v21, %v93_v39 }
  0x25   :  { %342 = vmatmul.mubr.bf16.vlgmr.msra.gmra.mxu0 %v189_v18  ;;  %374 = vmatmul.mubr.bf16.vlgmr.msra.gmra.mxu1 %v197_v49  ;;  %v110_v18 = vmul.f32 %v591_v20, %v67_v10  ;;  %v95_v20 = vmul.f32 %v589_v19, %v52_v29  ;;  %v153_v49 = vadd.f32 %v593_v21, %v109_v40 }
  0x26   :  { %453 = vmatprep.mubr.msk.bf16.mxu0 %vm284_vm0, %v192_v50  ;;  %457 = vmatprep.mubr.msk.bf16.mxu1 %vm284_vm0, %v200_v57  ;;  %v155_v50 = vadd.f32 %v593_v21, %v111_v41  ;;  %v169_v52 = vmax.f32 %v137_v47, 0.0 }
  0x27   :  { %v154_v32 = vadd.f32 %v595_v22, %v110_v18  ;;  %v170_v22 = vmax.f32 %v138_v28, 0.0  ;;  %v139_v48 = vadd.f32 %v593_v21, %v95_v20  ;;  %v185_v54 = vmax.f32 %v153_v49, 0.0  ;;  %v744_v21 = vld [vmem:[%s814_s4] ss:$0 sm:$0xff] }
  0x28   :  { %v187_v1 = vmax.f32 %v155_v50, 0.0 }
  0x29   :  { %v186_v43 = vmax.f32 %v154_v32, 0.0  ;;  %v196_v51 = vpack.c.bf16 %v172_v42, %v170_v22  ;;  %v171_v53 = vmax.f32 %v139_v48, 0.0 }
  0x2a   :  { %v203_v56 = vpack.c.bf16 %v187_v1, %v185_v54 }
  0x2b   :  { %v204_v19 = vpack.c.bf16 %v188_v44, %v186_v43  ;;  %v195_v55 = vpack.c.bf16 %v171_v53, %v169_v52 }
  0x2d   :  { %350 = vmatmul.mubr.bf16.gmra.mxu0 %v191_v11  ;;  %382 = vmatmul.mubr.bf16.gmra.mxu1 %v199_v12 }
  0x2e   :  { %454 = vmatprep.mubr.msk.bf16.mxu0 %vm284_vm0, %v194_v15  ;;  %458 = vmatprep.mubr.msk.bf16.mxu1 %vm284_vm0, %v202_v27 }
  0x35   :  { %358 = vmatmul.mubr.bf16.gmra.mxu0 %v193_v45  ;;  %390 = vmatmul.mubr.bf16.gmra.mxu1 %v201_v46 }
  0x36   :  { %455 = vmatprep.mubr.msk.bf16.mxu0 %vm284_vm0, %v196_v51  ;;  %459 = vmatprep.mubr.msk.bf16.mxu1 %vm284_vm0, %v204_v19 }
  0x3d   :  { %366 = vmatmul.mubr.bf16.gmra.mxu0 %v195_v55  ;;  %398 = vmatmul.mubr.bf16.gmra.mxu1 %v203_v56 }
  0xe5   :  { %v343_v57 = vpop.f32.mrf.mxu0  ;;  %v375_v58 = vpop.f32.mrf.mxu1 }
  0xe6   :  { %v344_v59 = vadd.f32 %v744_v21, %v343_v57  ;;  %v376_v60 = vadd.f32 %v744_v21, %v375_v58 }
  0xe7   :  { %v345_v61 = vpop.f32.mrf.mxu0  ;;  %v377_v62 = vpop.f32.mrf.mxu1 }
  0xe8   :  { %488 = vtanh.f32 %v344_v59 }
  0xe9   :  { %490 = vtanh.f32 %v376_v60  ;;  %v346_v63 = vpop.f32.mrf.mxu0  ;;  %v378_v0 = vpop.f32.mrf.mxu1 }
  0xea   :  { %v347_v2 = vadd.f32 %v744_v21, %v346_v63  ;;  %v379_v3 = vadd.f32 %v744_v21, %v378_v0 }
  0xeb   :  { %v348_v4 = vpop.f32.mrf.mxu0  ;;  %v380_v5 = vpop.f32.mrf.mxu1 }
  0xec   :  { %492 = vtanh.f32 %v347_v2 }
  0xed   :  { %494 = vtanh.f32 %v379_v3  ;;  %v351_v6 = vpop.f32.mrf.mxu0  ;;  %v383_v7 = vpop.f32.mrf.mxu1 }
  0xee   :  { %v352_v8 = vadd.f32 %v744_v21, %v351_v6  ;;  %v384_v9 = vadd.f32 %v744_v21, %v383_v7 }
  0xef   :  { %v353_v10 = vpop.f32.mrf.mxu0  ;;  %v385_v11 = vpop.f32.mrf.mxu1 }
  0xf0   :  { %496 = vtanh.f32 %v352_v8 }
  0xf1   :  { %498 = vtanh.f32 %v384_v9  ;;  %v354_v12 = vpop.f32.mrf.mxu0  ;;  %v386_v13 = vpop.f32.mrf.mxu1 }
  0xf2   :  { %v355_v14 = vadd.f32 %v744_v21, %v354_v12  ;;  %v387_v15 = vadd.f32 %v744_v21, %v386_v13 }
  0xf3   :  { %v356_v16 = vpop.f32.mrf.mxu0  ;;  %v388_v17 = vpop.f32.mrf.mxu1 }
  0xf4   :  { %500 = vtanh.f32 %v355_v14 }
  0xf5   :  { %v489_v18 = vpop.eup %488  ;;  %502 = vtanh.f32 %v387_v15  ;;  %v359_v23 = vpop.f32.mrf.mxu0 }
  0xf6   :  { %v391_v24 = vpop.f32.mrf.mxu1  ;;  %v491_v25 = vpop.eup %490  ;;  %422 = vst [vmem:[%s815_s5] sm:$0xff] %v489_v18  ;;  %v360_v26 = vadd.f32 %v744_v21, %v359_v23 }
  0xf7   :  { %v392_v27 = vadd.f32 %v744_v21, %v391_v24  ;;  %430 = vst [vmem:[%s815_s5 + $0x40] sm:$0xff] %v491_v25  ;;  %v361_v28 = vpop.f32.mrf.mxu0 }
  0xf8   :  { %v393_v29 = vpop.f32.mrf.mxu1  ;;  %504 = vtanh.f32 %v360_v26 }
  0xf9   :  { %v493_v30 = vpop.eup %492  ;;  %506 = vtanh.f32 %v392_v27  ;;  %v362_v31 = vpop.f32.mrf.mxu0 }
  0xfa   :  { %v394_v32 = vpop.f32.mrf.mxu1  ;;  %v495_v33 = vpop.eup %494  ;;  %423 = vst [vmem:[%s815_s5 + $0x8] sm:$0xff] %v493_v30  ;;  %v363_v34 = vadd.f32 %v744_v21, %v362_v31 }
  0xfb   :  { %v395_v35 = vadd.f32 %v744_v21, %v394_v32  ;;  %431 = vst [vmem:[%s815_s5 + $0x48] sm:$0xff] %v495_v33  ;;  %v364_v36 = vpop.f32.mrf.mxu0 }
  0xfc   :  { %v396_v37 = vpop.f32.mrf.mxu1  ;;  %508 = vtanh.f32 %v363_v34 }
  0xfd   :  { %v497_v38 = vpop.eup %496  ;;  %510 = vtanh.f32 %v395_v35  ;;  %v367_v39 = vpop.f32.mrf.mxu0 }
  0xfe   :  { %v399_v20 = vpop.f32.mrf.mxu1  ;;  %v499_v40 = vpop.eup %498  ;;  %424 = vst [vmem:[%s815_s5 + $0x10] sm:$0xff] %v497_v38  ;;  %v368_v41 = vadd.f32 %v744_v21, %v367_v39 }
  0xff   :  { %v400_v22 = vadd.f32 %v744_v21, %v399_v20  ;;  %432 = vst [vmem:[%s815_s5 + $0x50] sm:$0xff] %v499_v40  ;;  %v369_v42 = vpop.f32.mrf.mxu0 }
 0x100   :  { %v401_v43 = vpop.f32.mrf.mxu1  ;;  %512 = vtanh.f32 %v368_v41 }
 0x101   :  { %v501_v44 = vpop.eup %500  ;;  %514 = vtanh.f32 %v400_v22  ;;  %v370_v45 = vpop.f32.mrf.mxu0 }
 0x102   :  { %v402_v46 = vpop.f32.mrf.mxu1  ;;  %v503_v47 = vpop.eup %502  ;;  %425 = vst [vmem:[%s815_s5 + $0x18] sm:$0xff] %v501_v44  ;;  %v371_v48 = vadd.f32 %v744_v21, %v370_v45 }
 0x103   :  { %v403_v49 = vadd.f32 %v744_v21, %v402_v46  ;;  %433 = vst [vmem:[%s815_s5 + $0x58] sm:$0xff] %v503_v47  ;;  %v372_v50 = vpop.f32.mrf.mxu0 }
 0x104   :  { %v404_v51 = vpop.f32.mrf.mxu1  ;;  %516 = vtanh.f32 %v371_v48 }
 0x105   :  { %v505_v19 = vpop.eup %504  ;;  %518 = vtanh.f32 %v403_v49 }
 0x106   :  { %v507_v52 = vpop.eup %506  ;;  %426 = vst [vmem:[%s815_s5 + $0x20] sm:$0xff] %v505_v19 }
 0x107   :  { %434 = vst [vmem:[%s815_s5 + $0x60] sm:$0xff] %v507_v52 }
 0x109   :  { %v509_v53 = vpop.eup %508 }
 0x10a   :  { %v511_v54 = vpop.eup %510  ;;  %427 = vst [vmem:[%s815_s5 + $0x28] sm:$0xff] %v509_v53 }
 0x10b   :  { %435 = vst [vmem:[%s815_s5 + $0x68] sm:$0xff] %v511_v54 }
 0x10d   :  { %v513_v1 = vpop.eup %512 }
 0x10e   :  { %v515_v55 = vpop.eup %514  ;;  %428 = vst [vmem:[%s815_s5 + $0x30] sm:$0xff] %v513_v1 }
 0x10f   :  { %436 = vst [vmem:[%s815_s5 + $0x70] sm:$0xff] %v515_v55 }
 0x111   :  { %v517_v56 = vpop.eup %516 }
 0x112   :  { %v519_v21 = vpop.eup %518  ;;  %429 = vst [vmem:[%s815_s5 + $0x38] sm:$0xff] %v517_v56 }
 0x113   :  { %437 = vst [vmem:[%s815_s5 + $0x78] sm:$0xff] %v519_v21 }

</bundles_post_ra>
